<compile_context>
chip_gen: v7x
topology: tpu7x:2x2x1
jax: 0.10.0
libtpu: 0.0.40
codegen_flags: <defaults>
</compile_context>

<pallas_src>
import functools

import jax
import jax.numpy as jnp
from jax.experimental import pallas as pl
from jax.experimental.pallas import tpu as pltpu


def _round_up(x, m):
    return (x + m - 1) // m * m


# ---------------------------------------------------------------------------
# Fused kernel: the whole GNN_infer forward = 4 block-packed MXU matmuls.
# Activation row layouts (lane dim N = batch * H * W):
#   x  (KA, N): [ xp (C) | xh (C) | xf (C) | ones | zero pad ]
#   y1 (ME, N): [ bg (hid) | p nodes | h nodes | f node | ones | zero pad ]
# ---------------------------------------------------------------------------
def _fused_gnn_infer_kernel(x_ref, w_enc_ref, w_dec1_ref, w_bg2_ref, w_dec2_ref,
                            o_ref, *, hid, c3):
    x = x_ref[...]                                     # (KA, N) f32

    def mm(w_ref, a):
        # bf16 MXU operands, f32 accumulation on the MXU.
        return jnp.dot(w_ref[...], a.astype(jnp.bfloat16),
                       preferred_element_type=jnp.float32)

    relu = lambda v: jnp.maximum(v, 0.0)

    # --- stage 1: p/h/f node encoders + bg_conv as ONE matmul (BN + bias folded) ---
    y1 = relu(mm(w_enc_ref, x))                        # (ME, N)

    # TODO(synk): Composition / Decomposition / att_Update / Part_Dependency /
    # Pair_Part_Dependency module definitions are not provided in the source file,
    # so both GNN message-passing iterations are identity pass-throughs on the nodes.

    # --- stage 2: iteration-1 residual decoders (p/h/f) as ONE matmul -----------
    x1 = relu(x + mm(w_dec1_ref, y1))                  # (KA, N); ones row carried via x

    # --- stage 3: bg_conv2 on stacked [xp_i | xh_i | xf_i] (bias folded) ---------
    bg2 = relu(mm(w_bg2_ref, x1))                      # (hid, N)

    # --- stage 4: iteration-2 node bank = [bg2 | iteration-1 nodes | ones | pad] -
    y2 = jnp.concatenate([bg2, y1[hid:]], axis=0)      # (ME, N)

    # --- stage 5: iteration-2 residual decoders (p/h/f) as ONE matmul ------------
    x2 = relu(x1 + mm(w_dec2_ref, y2))                 # (KA, N)

    o_ref[...] = x2[:c3].astype(o_ref.dtype)           # (3C, N), lane-dense store


# ---------------------------------------------------------------------------
# Host-side parameters: synthetic conv weights + inference-mode BN folded
# exactly (scale = gamma/sqrt(var+eps), bias = beta - mean*scale).
# ---------------------------------------------------------------------------
def _fold_conv_bn(key, cin, cout, eps=1e-5):
    kw, kg, kb, km, kv = jax.random.split(key, 5)
    w = jax.random.normal(kw, (cout, cin), jnp.float32) / jnp.sqrt(float(cin))
    gamma = 1.0 + 0.1 * jax.random.normal(kg, (cout,), jnp.float32)
    beta = 0.1 * jax.random.normal(kb, (cout,), jnp.float32)
    mean = 0.1 * jax.random.normal(km, (cout,), jnp.float32)
    var = 1.0 + 0.1 * jax.random.uniform(kv, (cout,), jnp.float32)
    scale = gamma / jnp.sqrt(var + eps)
    return w * scale[:, None], beta - mean * scale


def init_raw_params(key, in_dim, hidden, cls_p, cls_h, cls_f):
    dims = {
        "p_conv":   (in_dim, hidden * (cls_p - 1)),
        "h_conv":   (in_dim, hidden * (cls_h - 1)),
        "f_conv":   (in_dim, hidden * (cls_f - 1)),
        "bg_conv":  (3 * in_dim, hidden),
        "p_dconv":  (hidden * cls_p, in_dim),
        "h_dconv":  (hidden * cls_h, in_dim),
        "f_dconv":  (hidden * cls_f, in_dim),
        "bg_conv2": (3 * in_dim, hidden),
        "p_dconv2": (hidden * cls_p, in_dim),
        "h_dconv2": (hidden * cls_h, in_dim),
        "f_dconv2": (hidden * cls_f, in_dim),
    }
    keys = jax.random.split(key, len(dims))
    return {name: _fold_conv_bn(k, ci, co)
            for (name, (ci, co)), k in zip(dims.items(), keys)}


def pack_params(raw, in_dim, hidden, cls_p, cls_h, cls_f):
    """Block-pack the 11 folded layers into 4 bf16 weight matrices (bias columns)."""
    cin, hid = in_dim, hidden
    n_p, n_h, n_f = hid * (cls_p - 1), hid * (cls_h - 1), hid * (cls_f - 1)
    c3 = 3 * cin
    ka = _round_up(c3 + 1, 8)                  # stacked input rows + ones row, padded
    n_node = hid + n_p + n_h + n_f             # [bg | p | h | f]
    me = _round_up(n_node + 1, 8)              # + ones-carry row, padded

    # --- encoder: [bg_conv | p_conv | h_conv | f_conv] as one (ME, KA) block ------
    we = jnp.zeros((me, ka), jnp.float32)
    w, b = raw["bg_conv"]
    we = we.at[0:hid, 0:c3].set(w).at[0:hid, c3].set(b)
    r = hid
    w, b = raw["p_conv"]
    we = we.at[r:r + n_p, 0:cin].set(w).at[r:r + n_p, c3].set(b); r += n_p
    w, b = raw["h_conv"]
    we = we.at[r:r + n_h, cin:2 * cin].set(w).at[r:r + n_h, c3].set(b); r += n_h
    w, b = raw["f_conv"]
    we = we.at[r:r + n_f, 2 * cin:3 * cin].set(w).at[r:r + n_f, c3].set(b); r += n_f
    we = we.at[n_node, c3].set(1.0)            # propagate the ones row into y1

    # --- decoders: [p_dconv | h_dconv | f_dconv] as one (KA, ME) block ------------
    def pack_dec(pw, pb, hw_, hb, fw, fb):
        wd = jnp.zeros((ka, me), jnp.float32)
        # p decoder rows: input = [bg | p nodes], bias column at n_node
        wd = wd.at[0:cin, 0:hid].set(pw[:, 0:hid])
        wd = wd.at[0:cin, hid:hid + n_p].set(pw[:, hid:hid + n_p])
        wd = wd.at[0:cin, n_node].set(pb)
        # h decoder rows: input = [bg | h nodes]
        wd = wd.at[cin:2 * cin, 0:hid].set(hw_[:, 0:hid])
        wd = wd.at[cin:2 * cin, hid + n_p:hid + n_p + n_h].set(hw_[:, hid:hid + n_h])
        wd = wd.at[cin:2 * cin, n_node].set(hb)
        # f decoder rows: input = [bg | f node]
        wd = wd.at[2 * cin:3 * cin, 0:hid].set(fw[:, 0:hid])
        wd = wd.at[2 * cin:3 * cin, hid + n_p + n_h:n_node].set(fw[:, hid:hid + n_f])
        wd = wd.at[2 * cin:3 * cin, n_node].set(fb)
        return wd                               # rows >= c3 stay zero (ones via residual)

    wd1 = pack_dec(*raw["p_dconv"], *raw["h_dconv"], *raw["f_dconv"])
    wd2 = pack_dec(*raw["p_dconv2"], *raw["h_dconv2"], *raw["f_dconv2"])

    # --- bg_conv2: dense over the stacked (c3) rows, bias folded -------------------
    w, b = raw["bg_conv2"]
    wb2 = jnp.zeros((hid, ka), jnp.float32).at[:, 0:c3].set(w).at[:, c3].set(b)

    return tuple(a.astype(jnp.bfloat16) for a in (we, wd1, wb2, wd2))


# ---------------------------------------------------------------------------
# Forward wrapper: single pallas_call; batch is folded into the lane dimension.
# ---------------------------------------------------------------------------
def gnn_infer_forward(packed, xp, xh, xf, *, batch_chunk=None):
    we, wd1, wb2, wd2 = packed
    B, C, H, W = xp.shape
    HW, C3 = H * W, 3 * C
    N = B * HW
    KA, ME, HID = we.shape[1], we.shape[0], wb2.shape[0]
    assert HW % 128 == 0, "H*W must be a multiple of 128 (lane dimension)"

    # For very large batches on v7x, set batch_chunk < B to shard chunks across the
    # two TensorCores; at B=2 a single fused step is optimal.
    if batch_chunk is None:
        batch_chunk = B
    assert B % batch_chunk == 0
    NC = batch_chunk * HW
    num_chunks = N // NC

    # Layout plumbing outside the kernel: stack [xp|xh|xf], flatten batch into lanes,
    # append the ones row (bias carrier) and zero padding rows.
    x = jnp.concatenate([xp, xh, xf], axis=1)                    # (B, 3C, H, W)
    x = x.reshape(B, C3, HW).transpose(1, 0, 2).reshape(C3, N)   # (3C, N)
    x_aug = jnp.concatenate(
        [x, jnp.ones((1, N), x.dtype), jnp.zeros((KA - C3 - 1, N), x.dtype)], axis=0)

    kernel = functools.partial(_fused_gnn_infer_kernel, hid=HID, c3=C3)

    out = pl.pallas_call(
        kernel,
        grid=(num_chunks,),
        in_specs=[
            pl.BlockSpec((KA, NC), lambda i: (0, i)),
            pl.BlockSpec(we.shape, lambda i: (0, 0)),    # weights stay VMEM-resident
            pl.BlockSpec(wd1.shape, lambda i: (0, 0)),
            pl.BlockSpec(wb2.shape, lambda i: (0, 0)),
            pl.BlockSpec(wd2.shape, lambda i: (0, 0)),
        ],
        out_specs=pl.BlockSpec((C3, NC), lambda i: (0, i)),
        out_shape=jax.ShapeDtypeStruct((C3, N), jnp.float32),
        compiler_params=pltpu.CompilerParams(dimension_semantics=("parallel",)),
    )(x_aug, we, wd1, wb2, wd2)

    # (3C, N) -> three (B, C, H, W) tensors.
    out = out.reshape(3, C, B, H, W).transpose(0, 2, 1, 3, 4)
    return out[0], out[1], out[2]


# ---------------------------------------------------------------------------
# Pure-JAX reference with the SAME numeric contract (bf16 MXU operands, f32
# accumulation, f32 element-wise) built from the unpacked per-layer weights, so
# it independently checks the host-side block packing.
# ---------------------------------------------------------------------------
def _reference_forward(raw, xp, xh, xf):
    B, C, H, W = xp.shape
    HW = H * W
    N = B * HW
    flat = lambda t: t.reshape(B, C, HW).transpose(1, 0, 2).reshape(C, N)
    unflat = lambda t: t.reshape(C, B, H, W).transpose(1, 0, 2, 3)
    xp_, xh_, xf_ = flat(xp), flat(xh), flat(xf)

    def mm(name, a):
        w, _ = raw[name]
        return jnp.dot(w.astype(jnp.bfloat16), a.astype(jnp.bfloat16),
                       preferred_element_type=jnp.float32)

    def bias(name):
        return raw[name][1].astype(jnp.bfloat16).astype(jnp.float32)[:, None]

    relu = lambda v: jnp.maximum(v, 0.0)
    cat = lambda ts: jnp.concatenate(ts, axis=0)

    p_nodes = relu(mm("p_conv", xp_) + bias("p_conv"))
    h_nodes = relu(mm("h_conv", xh_) + bias("h_conv"))
    f_node = relu(mm("f_conv", xf_) + bias("f_conv"))
    bg = relu(mm("bg_conv", cat([xp_, xh_, xf_])) + bias("bg_conv"))

    # identity GNN message passing (same TODO as the kernel)
    xp1 = relu(xp_ + mm("p_dconv", cat([bg, p_nodes])) + bias("p_dconv"))
    xh1 = relu(xh_ + mm("h_dconv", cat([bg, h_nodes])) + bias("h_dconv"))
    xf1 = relu(xf_ + mm("f_dconv", cat([bg, f_node])) + bias("f_dconv"))

    bg2 = relu(mm("bg_conv2", cat([xp1, xh1, xf1])) + bias("bg_conv2"))

    xp2 = relu(xp1 + mm("p_dconv2", cat([bg2, p_nodes])) + bias("p_dconv2"))
    xh2 = relu(xh1 + mm("h_dconv2", cat([bg2, h_nodes])) + bias("h_dconv2"))
    xf2 = relu(xf1 + mm("f_dconv2", cat([bg2, f_node])) + bias("f_dconv2"))

    return unflat(xp2), unflat(xh2), unflat(xf2)


if __name__ == "__main__":
    in_dim, hidden, cls_p, cls_h, cls_f = 32, 8, 7, 3, 2
    B, H, W = 2, 16, 16

    root = jax.random.PRNGKey(0)
    kp, kx1, kx2, kx3 = jax.random.split(root, 4)

    # adjacency matrix (constructor argument; only consumed by the unavailable
    # Part_Graph internals, kept for interface fidelity)
    adj_matrix = jnp.ones((cls_p - 1, cls_p - 1), jnp.float32) - jnp.eye(cls_p - 1)

    raw = init_raw_params(kp, in_dim, hidden, cls_p, cls_h, cls_f)
    packed = pack_params(raw, in_dim, hidden, cls_p, cls_h, cls_f)

    xp = jax.random.normal(kx1, (B, in_dim, H, W), jnp.float32)
    xh = jax.random.normal(kx2, (B, in_dim, H, W), jnp.float32)
    xf = jax.random.normal(kx3, (B, in_dim, H, W), jnp.float32)

    fwd = jax.jit(functools.partial(gnn_infer_forward, packed))
    xp_out, xh_out, xf_out = fwd(xp, xh, xf)
    jax.block_until_ready((xp_out, xh_out, xf_out))

    assert xp_out.shape == (B, in_dim, H, W)
    assert xh_out.shape == (B, in_dim, H, W)
    assert xf_out.shape == (B, in_dim, H, W)

    # numerical sanity check against the per-layer reference (same bf16/f32 contract)
    rp, rh, rf = _reference_forward(raw, xp, xh, xf)
    for got, ref in ((xp_out, rp), (xh_out, rh), (xf_out, rf)):
        err = float(jnp.max(jnp.abs(got - ref)))
        assert err < 5e-3, f"max abs error too large: {err}"

    print("KERNEL_OK")
</pallas_src>

<mosaic_0001>
module attributes {stable_mosaic.version = 11 : i64} {
  func.func @_fused_gnn_infer_kernel(%arg0: i32, %arg1: memref<104x512xf32, #tpu.memory_space<vmem>>, %arg2: memref<88x104xbf16, #tpu.memory_space<vmem>>, %arg3: memref<104x88xbf16, #tpu.memory_space<vmem>>, %arg4: memref<8x104xbf16, #tpu.memory_space<vmem>>, %arg5: memref<104x88xbf16, #tpu.memory_space<vmem>>, %arg6: memref<96x512xf32, #tpu.memory_space<vmem>>) attributes {dimension_semantics = [#tpu.dimension_semantics<parallel>], iteration_bounds = array<i64: 1>, scalar_prefetch = 0 : i64, scratch_operands = 0 : i64, tpu.core_type = #tpu.core_type<tc>, window_params = [{transform_indices = @transform_0, window_bounds = array<i64: 104, 512>}, {pipeline_mode = #tpu.pipeline_mode<synchronous>, transform_indices = @transform_1, window_bounds = array<i64: 88, 104>}, {pipeline_mode = #tpu.pipeline_mode<synchronous>, transform_indices = @transform_2, window_bounds = array<i64: 104, 88>}, {pipeline_mode = #tpu.pipeline_mode<synchronous>, transform_indices = @transform_3, window_bounds = array<i64: 8, 104>}, {pipeline_mode = #tpu.pipeline_mode<synchronous>, transform_indices = @transform_4, window_bounds = array<i64: 104, 88>}, {transform_indices = @transform_5, window_bounds = array<i64: 96, 512>}]} {
    %c0 = arith.constant 0 : index
    %c0_0 = arith.constant 0 : index
    %0 = vector.load %arg1[%c0, %c0_0] : memref<104x512xf32, #tpu.memory_space<vmem>>, vector<104x512xf32>
    %c0_1 = arith.constant 0 : index
    %c0_2 = arith.constant 0 : index
    %1 = vector.load %arg2[%c0_1, %c0_2] : memref<88x104xbf16, #tpu.memory_space<vmem>>, vector<88x104xbf16>
    %2 = arith.truncf %0 : vector<104x512xf32> to vector<104x512xbf16>
    %cst = arith.constant dense<0.000000e+00> : vector<88x512xf32>
    %3 = tpu.matmul %1, %2, %cst {dimension_numbers = #tpu.dot_dimension_numbers<[1], [0], [0], [1], [0, 0, 1, 1], [], []>} : vector<88x104xbf16>, vector<104x512xbf16>, vector<88x512xf32> -> vector<88x512xf32>
    %cst_3 = arith.constant 0.000000e+00 : f32
    %4 = vector.broadcast %cst_3 : f32 to vector<88x512xf32>
    %5 = arith.maximumf %3, %4 : vector<88x512xf32>
    %c0_4 = arith.constant 0 : index
    %c0_5 = arith.constant 0 : index
    %6 = vector.load %arg3[%c0_4, %c0_5] : memref<104x88xbf16, #tpu.memory_space<vmem>>, vector<104x88xbf16>
    %7 = arith.truncf %5 : vector<88x512xf32> to vector<88x512xbf16>
    %cst_6 = arith.constant dense<0.000000e+00> : vector<104x512xf32>
    %8 = tpu.matmul %6, %7, %cst_6 {dimension_numbers = #tpu.dot_dimension_numbers<[1], [0], [0], [1], [0, 0, 1, 1], [], []>} : vector<104x88xbf16>, vector<88x512xbf16>, vector<104x512xf32> -> vector<104x512xf32>
    %9 = arith.addf %0, %8 : vector<104x512xf32>
    %cst_7 = arith.constant 0.000000e+00 : f32
    %10 = vector.broadcast %cst_7 : f32 to vector<104x512xf32>
    %11 = arith.maximumf %9, %10 : vector<104x512xf32>
    %c0_8 = arith.constant 0 : index
    %c0_9 = arith.constant 0 : index
    %12 = vector.load %arg4[%c0_8, %c0_9] : memref<8x104xbf16, #tpu.memory_space<vmem>>, vector<8x104xbf16>
    %13 = arith.truncf %11 : vector<104x512xf32> to vector<104x512xbf16>
    %cst_10 = arith.constant dense<0.000000e+00> : vector<8x512xf32>
    %14 = tpu.matmul %12, %13, %cst_10 {dimension_numbers = #tpu.dot_dimension_numbers<[1], [0], [0], [1], [0, 0, 1, 1], [], []>} : vector<8x104xbf16>, vector<104x512xbf16>, vector<8x512xf32> -> vector<8x512xf32>
    %cst_11 = arith.constant 0.000000e+00 : f32
    %15 = vector.broadcast %cst_11 : f32 to vector<8x512xf32>
    %16 = arith.maximumf %14, %15 : vector<8x512xf32>
    %17 = vector.extract_strided_slice %5 {offsets = [8, 0], sizes = [80, 512], strides = [1, 1]} : vector<88x512xf32> to vector<80x512xf32>
    %18 = tpu.concatenate %16, %17 in 0 : vector<8x512xf32>, vector<80x512xf32> -> vector<88x512xf32>
    %c0_12 = arith.constant 0 : index
    %c0_13 = arith.constant 0 : index
    %19 = vector.load %arg5[%c0_12, %c0_13] : memref<104x88xbf16, #tpu.memory_space<vmem>>, vector<104x88xbf16>
    %20 = arith.truncf %18 : vector<88x512xf32> to vector<88x512xbf16>
    %cst_14 = arith.constant dense<0.000000e+00> : vector<104x512xf32>
    %21 = tpu.matmul %19, %20, %cst_14 {dimension_numbers = #tpu.dot_dimension_numbers<[1], [0], [0], [1], [0, 0, 1, 1], [], []>} : vector<104x88xbf16>, vector<88x512xbf16>, vector<104x512xf32> -> vector<104x512xf32>
    %22 = arith.addf %11, %21 : vector<104x512xf32>
    %cst_15 = arith.constant 0.000000e+00 : f32
    %23 = vector.broadcast %cst_15 : f32 to vector<104x512xf32>
    %24 = arith.maximumf %22, %23 : vector<104x512xf32>
    %25 = vector.extract_strided_slice %24 {offsets = [0, 0], sizes = [96, 512], strides = [1, 1]} : vector<104x512xf32> to vector<96x512xf32>
    %c0_16 = arith.constant 0 : index
    %c0_17 = arith.constant 0 : index
    %26 = vector.load %arg6[%c0_16, %c0_17] : memref<96x512xf32, #tpu.memory_space<vmem>>, vector<96x512xf32>
    tpu.vector_store %arg6[%c0_16, %c0_17], %25 {strides = array<i32>} : memref<96x512xf32, #tpu.memory_space<vmem>>, vector<96x512xf32>,
    return
  }
  func.func @transform_0(%arg0: i32) -> (i32, i32) {
    %c0_i32 = arith.constant 0 : i32
    %c0_i32_0 = arith.constant 0 : i32
    return %c0_i32, %arg0 : i32, i32
  }
  func.func @transform_1(%arg0: i32) -> (i32, i32) {
    %c0_i32 = arith.constant 0 : i32
    %c0_i32_0 = arith.constant 0 : i32
    %c0_i32_1 = arith.constant 0 : i32
    return %c0_i32, %c0_i32_0 : i32, i32
  }
  func.func @transform_2(%arg0: i32) -> (i32, i32) {
    %c0_i32 = arith.constant 0 : i32
    %c0_i32_0 = arith.constant 0 : i32
    %c0_i32_1 = arith.constant 0 : i32
    return %c0_i32, %c0_i32_0 : i32, i32
  }
  func.func @transform_3(%arg0: i32) -> (i32, i32) {
    %c0_i32 = arith.constant 0 : i32
    %c0_i32_0 = arith.constant 0 : i32
    %c0_i32_1 = arith.constant 0 : i32
    return %c0_i32, %c0_i32_0 : i32, i32
  }
  func.func @transform_4(%arg0: i32) -> (i32, i32) {
    %c0_i32 = arith.constant 0 : i32
    %c0_i32_0 = arith.constant 0 : i32
    %c0_i32_1 = arith.constant 0 : i32
    return %c0_i32, %c0_i32_0 : i32, i32
  }
  func.func @transform_5(%arg0: i32) -> (i32, i32) {
    %c0_i32 = arith.constant 0 : i32
    %c0_i32_0 = arith.constant 0 : i32
    return %c0_i32, %arg0 : i32, i32
  }
}

</mosaic_0001>

<bundles_post_ra>
// kernel: gnn_infer_forward.1
= control target key start
LH: loop header
LB: loop body
LE: loop exit
PB: predicated region body
PF: predicated region fallthrough
CT: control target
= control target key end

     0   :  { %v2601_v3 = vmov 0   ;;  %vm159_vm0 = vcmask 1043456   ;;  %vm140_vm1 = vcmask 850944   ;;  %vm468_vm2 = vcmask 719872   ;;  %s2594_s0 = inlined_call_operand.vmem [shape: f32[104,512], index: 0, kind: input, shape index: {}]   ;;  %s2595_s1 = inlined_call_operand.vmem [shape: bf16[88,104], index: 1, kind: input, shape index: {}]   ;;  %s2596_s2 = inlined_call_operand.vmem [shape: bf16[104,88], index: 2, kind: input, shape index: {}]   ;;  %s2597_s3 = inlined_call_operand.vmem [shape: bf16[8,104], index: 3, kind: input, shape index: {}]   ;;  %s2598_s4 = inlined_call_operand.vmem [shape: bf16[104,88], index: 4, kind: input, shape index: {}]   ;;  %s2599_s5 = inlined_call_operand.vmem [shape: f32[96,512], index: 5, kind: output, shape index: {}]  }
   0x1   :  { %v1480_v0 = vld [vmem:[%s2594_s0 + $0x8] sm:$0xff]  ;;  %v1490_v2 = vld [vmem:[%s2594_s0 + $0x18] sm:$0xff]  ;;  %204 = vmatprep.mubr.bf16.mxu0 %v2601_v3  ;;  %295 = vmatprep.mubr.bf16.mxu1 %v2601_v3  ;;  %v1504_v6 = vld [vmem:[%s2594_s0] sm:$0xff] }
   0x2   :  { %v1485_v1 = vld [vmem:[%s2594_s0 + $0x28] sm:$0xff]  ;;  %v1499_v5 = vld [vmem:[%s2594_s0 + $0x38] sm:$0xff]  ;;  %v1509_v7 = vld [vmem:[%s2594_s0 + $0x20] sm:$0xff] }
   0x3   :  { %v85_v4 = vpack.c.bf16 %v1485_v1, %v1480_v0  ;;  %v87_v8 = vpack.c.bf16 %v1499_v5, %v1490_v2  ;;  %v84_v9 = vpack.c.bf16 %v1509_v7, %v1504_v6  ;;  %v1518_v10 = vld [vmem:[%s2594_s0 + $0x10] sm:$0xff]  ;;  %v1528_v12 = vld [vmem:[%s2594_s0 + $0x48] sm:$0xff]  ;;  %v1540_v15 = vld [vmem:[%s2594_s0 + $0x58] sm:$0xff] }
   0x4   :  { %v1523_v11 = vld [vmem:[%s2594_s0 + $0x30] sm:$0xff]  ;;  %v1535_v14 = vld [vmem:[%s2594_s0 + $0x68] sm:$0xff]  ;;  %v1545_v16 = vld [vmem:[%s2594_s0 + $0x78] sm:$0xff] }
   0x5   :  { %172 = vmatprep.subr.bf16.mxu0 %v85_v4  ;;  %v86_v13 = vpack.c.bf16 %v1523_v11, %v1518_v10  ;;  %263 = vmatprep.subr.bf16.mxu1 %v87_v8  ;;  %v89_v17 = vpack.c.bf16 %v1535_v14, %v1528_v12  ;;  %v91_v18 = vpack.c.bf16 %v1545_v16, %v1540_v15  ;;  %v1554_v19 = vld [vmem:[%s2594_s0 + $0x40] sm:$0xff]  ;;  %v1564_v21 = vld [vmem:[%s2594_s0 + $0x50] sm:$0xff]  ;;  %v1576_v24 = vld [vmem:[%s2594_s0 + $0x88] sm:$0xff] }
   0x6   :  { %173 = vmatpush1.bf16.msra.mxu0 %v84_v9  ;;  %v1559_v20 = vld [vmem:[%s2594_s0 + $0x60] sm:$0xff]  ;;  %v1571_v23 = vld [vmem:[%s2594_s0 + $0x70] sm:$0xff]  ;;  %v1581_v25 = vld [vmem:[%s2594_s0 + $0xa8] sm:$0xff] }
   0x7   :  { %264 = vmatpush1.bf16.msra.mxu1 %v86_v13  ;;  %v88_v22 = vpack.c.bf16 %v1559_v20, %v1554_v19  ;;  %174 = vmatprep.subr.bf16.mxu0 %v89_v17  ;;  %v90_v26 = vpack.c.bf16 %v1571_v23, %v1564_v21  ;;  %v93_v27 = vpack.c.bf16 %v1581_v25, %v1576_v24  ;;  %v1590_v28 = vld [vmem:[%s2594_s0 + $0x98] sm:$0xff]  ;;  %v1600_v30 = vld [vmem:[%s2594_s0 + $0x80] sm:$0xff]  ;;  %v1612_v33 = vld [vmem:[%s2594_s0 + $0x90] sm:$0xff] }
   0x8   :  { %265 = vmatprep.subr.bf16.mxu1 %v91_v18  ;;  %v1595_v29 = vld [vmem:[%s2594_s0 + $0xb8] sm:$0xff]  ;;  %v1607_v32 = vld [vmem:[%s2594_s0 + $0xa0] sm:$0xff]  ;;  %v1617_v34 = vld [vmem:[%s2594_s0 + $0xb0] sm:$0xff] }
   0x9   :  { %v95_v31 = vpack.c.bf16 %v1595_v29, %v1590_v28  ;;  %v92_v35 = vpack.c.bf16 %v1607_v32, %v1600_v30  ;;  %v1624_v36 = vld [vmem:[%s2594_s0 + $0xc8] sm:$0xff]  ;;  %v1634_v38 = vld [vmem:[%s2594_s0 + $0xd8] sm:$0xff]  ;;  %v94_v39 = vpack.c.bf16 %v1617_v34, %v1612_v33  ;;  %v1648_v42 = vld [vmem:[%s2594_s0 + $0xc0] sm:$0xff] }
   0xa   :  { %175 = vmatpush1.bf16.msra.mxu0 %v88_v22  ;;  %v1629_v37 = vld [vmem:[%s2594_s0 + $0xe8] sm:$0xff]  ;;  %v1643_v41 = vld [vmem:[%s2594_s0 + $0xf8] sm:$0xff]  ;;  %v1653_v43 = vld [vmem:[%s2594_s0 + $0xe0] sm:$0xff] }
   0xb   :  { %266 = vmatpush1.bf16.msra.mxu1 %v90_v26  ;;  %176 = vmatprep.subr.bf16.mxu0 %v93_v27  ;;  %v97_v40 = vpack.c.bf16 %v1629_v37, %v1624_v36  ;;  %v99_v44 = vpack.c.bf16 %v1643_v41, %v1634_v38  ;;  %v1660_v45 = vld [vmem:[%s2594_s0 + $0xd0] sm:$0xff]  ;;  %v1670_v47 = vld [vmem:[%s2594_s0 + $0x108] sm:$0xff]  ;;  %v1680_v49 = vld [vmem:[%s2594_s0 + $0x118] sm:$0xff]  ;;  %v96_v51 = vpack.c.bf16 %v1653_v43, %v1648_v42 }
   0xc   :  { %267 = vmatprep.subr.bf16.mxu1 %v95_v31  ;;  %v1665_v46 = vld [vmem:[%s2594_s0 + $0xf0] sm:$0xff]  ;;  %v1675_v48 = vld [vmem:[%s2594_s0 + $0x128] sm:$0xff]  ;;  %v1685_v50 = vld [vmem:[%s2594_s0 + $0x138] sm:$0xff] }
   0xd   :  { %v1692_v52 = vld [vmem:[%s2594_s0 + $0x100] sm:$0xff]  ;;  %v98_v53 = vpack.c.bf16 %v1665_v46, %v1660_v45  ;;  %v101_v54 = vpack.c.bf16 %v1675_v48, %v1670_v47  ;;  %v1706_v56 = vld [vmem:[%s2594_s0 + $0x110] sm:$0xff]  ;;  %v103_v58 = vpack.c.bf16 %v1685_v50, %v1680_v49  ;;  %v1718_v59 = vld [vmem:[%s2594_s0 + $0x148] sm:$0xff] }
   0xe   :  { %177 = vmatpush1.bf16.msra.mxu0 %v92_v35  ;;  %v1701_v55 = vld [vmem:[%s2594_s0 + $0x120] sm:$0xff]  ;;  %v1711_v57 = vld [vmem:[%s2594_s0 + $0x130] sm:$0xff]  ;;  %v1723_v60 = vld [vmem:[%s2594_s0 + $0x168] sm:$0xff] }
   0xf   :  { %268 = vmatpush1.bf16.msra.mxu1 %v94_v39  ;;  %178 = vmatprep.subr.bf16.mxu0 %v97_v40  ;;  %2693 = vst [vmem:[#allocation2_spill] sm:$0xff] %v1723_v60  ;;  %v1728_v61 = vld [vmem:[%s2594_s0 + $0x158] sm:$0xff]  ;;  %v1738_v63 = vld [vmem:[%s2594_s0 + $0x140] sm:$0xff]  ;;  %v100_v8 = vpack.c.bf16 %v1701_v55, %v1692_v52  ;;  %v1750_v9 = vld [vmem:[%s2594_s0 + $0x150] sm:$0xff]  ;;  %v102_v18 = vpack.c.bf16 %v1711_v57, %v1706_v56 }
  0x10   :  { %269 = vmatprep.subr.bf16.mxu1 %v99_v44  ;;  %v1733_v62 = vld [vmem:[%s2594_s0 + $0x178] sm:$0xff]  ;;  %v1743_v4 = vld [vmem:[%s2594_s0 + $0x160] sm:$0xff]  ;;  %2696 = vst [vmem:[#allocation5_spill] sm:$0xff] %v1750_v9  ;;  %v1755_v13 = vld [vmem:[%s2594_s0 + $0x170] sm:$0xff]  ;;  %v105_v22 = vpack.c.bf16 %v1723_v60, %v1718_v59 }
  0x11   :  { %2694 = vst [vmem:[#allocation3_spill] sm:$0xff] %v1733_v62  ;;  %2695 = vst [vmem:[#allocation4_spill] sm:$0xff] %v1743_v4  ;;  %v1760_v17 = vld [vmem:[%s2594_s0 + $0x188] sm:$0xff]  ;;  %v1769_v26 = vld [vmem:[%s2594_s0 + $0x198] sm:$0xff]  ;;  %v107_v27 = vpack.c.bf16 %v1733_v62, %v1728_v61  ;;  %v104_v39 = vpack.c.bf16 %v1743_v4, %v1738_v63  ;;  %v106_v40 = vpack.c.bf16 %v1755_v13, %v1750_v9 }
  0x12   :  { %179 = vmatpush1.bf16.msra.mxu0 %v96_v51  ;;  %2697 = vst [vmem:[#allocation6_spill] sm:$0xff] %v1755_v13  ;;  %2698 = vst [vmem:[#allocation7_spill] sm:$0xff] %v1760_v17  ;;  %v1776_v31 = vld [vmem:[%s2594_s0 + $0x180] sm:$0xff]  ;;  %v1781_v35 = vld [vmem:[%s2594_s0 + $0x190] sm:$0xff]  ;;  %v109_v44 = vpack.c.bf16 %v1760_v17, %v1760_v17 }
  0x13   :  { %270 = vmatpush1.bf16.msra.mxu1 %v98_v53  ;;  %180 = vmatprep.subr.bf16.mxu0 %v101_v54  ;;  %2699 = vst [vmem:[#allocation8_spill] sm:$0xff] %v1769_v26  ;;  %2700 = vst [vmem:[#allocation9_spill] sm:$0xff] %v1776_v31  ;;  %v108_v51 = vpack.c.bf16 %v1776_v31, %v1776_v31  ;;  %v111_v53 = vpack.c.bf16 %v1769_v26, %v1769_v26 }
  0x14   :  { %271 = vmatprep.subr.bf16.mxu1 %v103_v58  ;;  %2701 = vst [vmem:[#allocation10_spill] sm:$0xff] %v1781_v35  ;;  %v110_v54 = vpack.c.bf16 %v1781_v35, %v1781_v35 }
  0x15   :  { %v161_v58 = vsel %vm159_vm0, %v108_v51, 0 }
  0x16   :  { %181 = vmatpush1.bf16.msra.mxu0 %v100_v8  ;;  %v167_v8 = vsel %vm159_vm0, %v110_v54, 0 }
  0x17   :  { %272 = vmatpush1.bf16.msra.mxu1 %v102_v18  ;;  %182 = vmatprep.subr.bf16.mxu0 %v105_v22  ;;  %v1426_v18 = vld [vmem:[%s2595_s1] sm:$0xff]   ;;  %v1427_v22 = vld [vmem:[%s2595_s1 + $0x8] sm:$0xff]  }
  0x18   :  { %273 = vmatprep.subr.bf16.mxu1 %v107_v27  ;;  %v1428_v27 = vld [vmem:[%s2595_s1 + $0x10] sm:$0xff]  }
  0x1a   :  { %183 = vmatpush1.bf16.msra.mxu0 %v104_v39  ;;  %v1429_v39 = vld [vmem:[%s2595_s1 + $0x18] sm:$0xff]  }
  0x1b   :  { %274 = vmatpush1.bf16.msra.mxu1 %v106_v40  ;;  %1361 = vmatprep.subr.msk.bf16.mxu0 %vm159_vm0, %v109_v44  ;;  %v1430_v40 = vld [vmem:[%s2595_s1 + $0x20] sm:$0xff]   ;;  %v1431_v44 = vld [vmem:[%s2595_s1 + $0x28] ss:$0 sps:$4 sm:$0xff]  }
  0x1c   :  { %1368 = vmatprep.subr.msk.bf16.mxu1 %vm159_vm0, %v111_v53 }
  0x1e   :  { %185 = vmatpush1.bf16.msra.mxu0 %v161_v58 }
  0x1f   :  { %276 = vmatpush1.bf16.msra.mxu1 %v167_v8 }
  0x21   :  { %1362 = vmatmul.mubr.msk.bf16.vlgmr.msra.gmra.mrb[0].mxu0 %vm140_vm1, %v1426_v18 }
  0x22   :  { %1369 = vmatmul.mubr.msk.bf16.vlgmr.msra.gmra.mrb[0].mxu1 %vm140_vm1, %v1426_v18  ;;  %214 = vmatprep.mubr.bf16.mxu0 %v2601_v3 }
  0x23   :  { %305 = vmatprep.mubr.bf16.mxu1 %v2601_v3 }
  0x29   :  { %1363 = vmatmul.mubr.msk.bf16.gmra.mrb[4].mxu0 %vm140_vm1, %v1427_v22 }
  0x2a   :  { %1370 = vmatmul.mubr.msk.bf16.gmra.mrb[4].mxu1 %vm140_vm1, %v1427_v22  ;;  %224 = vmatprep.mubr.bf16.mxu0 %v2601_v3 }
  0x2b   :  { %315 = vmatprep.mubr.bf16.mxu1 %v2601_v3 }
  0x31   :  { %1364 = vmatmul.mubr.msk.bf16.gmra.mrb[8].mxu0 %vm140_vm1, %v1428_v27 }
  0x32   :  { %1371 = vmatmul.mubr.msk.bf16.gmra.mrb[8].mxu1 %vm140_vm1, %v1428_v27  ;;  %234 = vmatprep.mubr.bf16.mxu0 %v2601_v3 }
  0x33   :  { %325 = vmatprep.mubr.bf16.mxu1 %v2601_v3 }
  0x39   :  { %1365 = vmatmul.mubr.msk.bf16.gmra.mrb[12].mxu0 %vm140_vm1, %v1429_v39 }
  0x3a   :  { %1372 = vmatmul.mubr.msk.bf16.gmra.mrb[12].mxu1 %vm140_vm1, %v1429_v39  ;;  %244 = vmatprep.mubr.bf16.mxu0 %v2601_v3 }
  0x3b   :  { %335 = vmatprep.mubr.bf16.mxu1 %v2601_v3 }
  0x41   :  { %1366 = vmatmul.mubr.msk.bf16.gmra.mrb[16].mxu0 %vm140_vm1, %v1430_v40 }
  0x42   :  { %1373 = vmatmul.mubr.msk.bf16.gmra.mrb[16].mxu1 %vm140_vm1, %v1430_v40  ;;  %254 = vmatprep.mubr.bf16.mxu0 %v2601_v3 }
  0x43   :  { %345 = vmatprep.mubr.bf16.mxu1 %v2601_v3 }
  0x49   :  { %1367 = vmatmul.mubr.msk.bf16.gmra.mrb[20].mxu0 %vm140_vm1, %v1431_v44 }
  0x4a   :  { %1374 = vmatmul.mubr.msk.bf16.gmra.mrb[20].mxu1 %vm140_vm1, %v1431_v44  ;;  %534 = vmatprep.mubr.bf16.mxu0 %v2601_v3 }
  0x4b   :  { %635 = vmatprep.mubr.bf16.mxu1 %v2601_v3 }
  0xf4   :  { %v206_v51 = vpop.f32.mrb[0].mxu0 }
  0xf5   :  { %v297_v53 = vpop.f32.mrb[0].mxu1  ;;  %v208_v54 = vpop.f32.mrb[1].mxu0  ;;  %v354_v3 = vmax.f32 %v206_v51, 0.0 }
  0xf6   :  { %v299_v58 = vpop.f32.mrb[1].mxu1  ;;  %v1841_v8 = vpop.f32.mrb[2].mxu0  ;;  %v355_v39 = vmax.f32 %v208_v54, 0.0  ;;  %v356_v31 = vmax.f32 %v297_v53, 0.0 }
  0xf7   :  { %2702 = vst [vmem:[#allocation11_spill] sm:$0xff] %v1841_v8  ;;  %v2614_v18 = vmax.f32 %v1841_v8, 0.0  ;;  %v1844_v22 = vpop.f32.mrb[2].mxu1  ;;  %v1846_v27 = vpop.f32.mrb[3].mxu0  ;;  %v357_v17 = vmax.f32 %v299_v58, 0.0 }
  0xf8   :  { %2703 = vst [vmem:[#allocation12_spill] sm:$0xff] %v1844_v22  ;;  %2704 = vst [vmem:[#allocation13_spill] sm:$0xff] %v1846_v27  ;;  %v2618_v40 = vmax.f32 %v1844_v22, 0.0  ;;  %v2612_v44 = vmax.f32 %v1846_v27, 0.0  ;;  %v1850_v26 = vpop.f32.mrb[3].mxu1 }
  0xf9   :  { %2705 = vst [vmem:[#allocation14_spill] sm:$0xff] %v1850_v26  ;;  %v2616_v35 = vmax.f32 %v1850_v26, 0.0  ;;  %v411_v60 = vpack.c.bf16 %v2614_v18, %v354_v3 }
  0xfa   :  { %v412_v62 = vpack.c.bf16 %v2612_v44, %v355_v39  ;;  %v413_v13 = vpack.c.bf16 %v2618_v40, %v356_v31 }
  0xfb   :  { %v414_v54 = vpack.c.bf16 %v2616_v35, %v357_v17 }
  0xfc   :  { %v216_v9 = vpop.f32.mrb[4].mxu0  ;;  %502 = vmatprep.subr.bf16.mxu0 %v412_v62 }
  0xfd   :  { %v307_v4 = vpop.f32.mrb[4].mxu1  ;;  %603 = vmatprep.subr.bf16.mxu1 %v414_v54  ;;  %v218_v51 = vpop.f32.mrb[5].mxu0  ;;  %503 = vmatpush1.bf16.msra.mxu0 %v411_v60  ;;  %v362_v27 = vmax.f32 %v216_v9, 0.0 }
  0xfe   :  { %v309_v58 = vpop.f32.mrb[5].mxu1  ;;  %604 = vmatpush1.bf16.msra.mxu1 %v413_v13  ;;  %v220_v53 = vpop.f32.mrb[6].mxu0  ;;  %v364_v3 = vmax.f32 %v307_v4, 0.0  ;;  %v363_v18 = vmax.f32 %v218_v51, 0.0 }
  0xff   :  { %v366_v39 = vmax.f32 %v220_v53, 0.0  ;;  %v311_v44 = vpop.f32.mrb[6].mxu1  ;;  %v222_v8 = vpop.f32.mrb[7].mxu0  ;;  %v365_v22 = vmax.f32 %v309_v58, 0.0 }
 0x100   :  { %v368_v26 = vmax.f32 %v311_v44, 0.0  ;;  %v367_v17 = vmax.f32 %v222_v8, 0.0  ;;  %v313_v35 = vpop.f32.mrb[7].mxu1 }
 0x101   :  { %v1861_v31 = vpack.c.bf16 %v366_v39, %v362_v27  ;;  %v369_v62 = vmax.f32 %v313_v35, 0.0 }
 0x102   :  { %v1863_v40 = vpack.c.bf16 %v368_v26, %v364_v3  ;;  %v1865_v54 = vpack.c.bf16 %v367_v17, %v363_v18 }
 0x103   :  { %2706 = vst [vmem:[#allocation15_spill] sm:$0xff] %v1861_v31  ;;  %v1867_v60 = vpack.c.bf16 %v369_v62, %v365_v22 }
 0x104   :  { %2707 = vst [vmem:[#allocation16_spill] sm:$0xff] %v1863_v40  ;;  %2708 = vst [vmem:[#allocation17_spill] sm:$0xff] %v1865_v54  ;;  %v226_v13 = vpop.f32.mrb[8].mxu0  ;;  %504 = vmatprep.subr.bf16.mxu0 %v1865_v54 }
 0x105   :  { %2709 = vst [vmem:[#allocation18_spill] sm:$0xff] %v1867_v60  ;;  %v317_v9 = vpop.f32.mrb[8].mxu1  ;;  %605 = vmatprep.subr.bf16.mxu1 %v1867_v60  ;;  %v228_v4 = vpop.f32.mrb[9].mxu0  ;;  %505 = vmatpush1.bf16.msra.mxu0 %v1861_v31  ;;  %v370_v35 = vmax.f32 %v226_v13, 0.0 }
 0x106   :  { %v319_v8 = vpop.f32.mrb[9].mxu1  ;;  %606 = vmatpush1.bf16.msra.mxu1 %v1863_v40  ;;  %v230_v27 = vpop.f32.mrb[10].mxu0  ;;  %v372_v51 = vmax.f32 %v317_v9, 0.0  ;;  %v371_v22 = vmax.f32 %v228_v4, 0.0 }
 0x107   :  { %v374_v26 = vmax.f32 %v230_v27, 0.0  ;;  %v321_v44 = vpop.f32.mrb[10].mxu1  ;;  %v232_v18 = vpop.f32.mrb[11].mxu0  ;;  %v373_v3 = vmax.f32 %v319_v8, 0.0 }
 0x108   :  { %v376_v58 = vmax.f32 %v321_v44, 0.0  ;;  %v375_v53 = vmax.f32 %v232_v18, 0.0  ;;  %v323_v39 = vpop.f32.mrb[11].mxu1 }
 0x109   :  { %v1873_v17 = vpack.c.bf16 %v374_v26, %v370_v35  ;;  %v377_v62 = vmax.f32 %v323_v39, 0.0 }
 0x10a   :  { %v1875_v60 = vpack.c.bf16 %v376_v58, %v372_v51  ;;  %v1877_v31 = vpack.c.bf16 %v375_v53, %v371_v22 }
 0x10b   :  { %2710 = vst [vmem:[#allocation19_spill] sm:$0xff] %v1873_v17  ;;  %v1879_v54 = vpack.c.bf16 %v377_v62, %v373_v3 }
 0x10c   :  { %2711 = vst [vmem:[#allocation20_spill] sm:$0xff] %v1875_v60  ;;  %2712 = vst [vmem:[#allocation21_spill] sm:$0xff] %v1877_v31  ;;  %v236_v40 = vpop.f32.mrb[12].mxu0  ;;  %506 = vmatprep.subr.bf16.mxu0 %v1877_v31 }
 0x10d   :  { %2713 = vst [vmem:[#allocation22_spill] sm:$0xff] %v1879_v54  ;;  %v327_v13 = vpop.f32.mrb[12].mxu1  ;;  %607 = vmatprep.subr.bf16.mxu1 %v1879_v54  ;;  %v238_v9 = vpop.f32.mrb[13].mxu0  ;;  %507 = vmatpush1.bf16.msra.mxu0 %v1873_v17  ;;  %v378_v27 = vmax.f32 %v236_v40, 0.0 }
 0x10e   :  { %v329_v4 = vpop.f32.mrb[13].mxu1  ;;  %608 = vmatpush1.bf16.msra.mxu1 %v1875_v60  ;;  %v240_v8 = vpop.f32.mrb[14].mxu0  ;;  %v380_v18 = vmax.f32 %v327_v13, 0.0  ;;  %v379_v51 = vmax.f32 %v238_v9, 0.0 }
 0x10f   :  { %v382_v35 = vmax.f32 %v240_v8, 0.0  ;;  %v331_v26 = vpop.f32.mrb[14].mxu1  ;;  %v242_v44 = vpop.f32.mrb[15].mxu0  ;;  %v381_v39 = vmax.f32 %v329_v4, 0.0 }
 0x110   :  { %v384_v22 = vmax.f32 %v331_v26, 0.0  ;;  %v383_v58 = vmax.f32 %v242_v44, 0.0  ;;  %v333_v53 = vpop.f32.mrb[15].mxu1 }
 0x111   :  { %v1885_v3 = vpack.c.bf16 %v382_v35, %v378_v27  ;;  %v385_v62 = vmax.f32 %v333_v53, 0.0 }
 0x112   :  { %v1887_v54 = vpack.c.bf16 %v384_v22, %v380_v18  ;;  %v1889_v17 = vpack.c.bf16 %v383_v58, %v379_v51 }
 0x113   :  { %2714 = vst [vmem:[#allocation23_spill] sm:$0xff] %v1885_v3  ;;  %v1891_v31 = vpack.c.bf16 %v385_v62, %v381_v39 }
 0x114   :  { %2715 = vst [vmem:[#allocation24_spill] sm:$0xff] %v1887_v54  ;;  %2716 = vst [vmem:[#allocation25_spill] sm:$0xff] %v1889_v17  ;;  %v246_v60 = vpop.f32.mrb[16].mxu0  ;;  %508 = vmatprep.subr.bf16.mxu0 %v1889_v17 }
 0x115   :  { %2717 = vst [vmem:[#allocation26_spill] sm:$0xff] %v1891_v31  ;;  %v337_v40 = vpop.f32.mrb[16].mxu1  ;;  %609 = vmatprep.subr.bf16.mxu1 %v1891_v31  ;;  %v248_v13 = vpop.f32.mrb[17].mxu0  ;;  %509 = vmatpush1.bf16.msra.mxu0 %v1885_v3  ;;  %v386_v8 = vmax.f32 %v246_v60, 0.0 }
 0x116   :  { %v339_v9 = vpop.f32.mrb[17].mxu1  ;;  %610 = vmatpush1.bf16.msra.mxu1 %v1887_v54  ;;  %v250_v4 = vpop.f32.mrb[18].mxu0  ;;  %v388_v44 = vmax.f32 %v337_v40, 0.0  ;;  %v387_v18 = vmax.f32 %v248_v13, 0.0 }
 0x117   :  { %v390_v27 = vmax.f32 %v250_v4, 0.0  ;;  %v341_v35 = vpop.f32.mrb[18].mxu1  ;;  %v252_v26 = vpop.f32.mrb[19].mxu0  ;;  %v389_v53 = vmax.f32 %v339_v9, 0.0 }
 0x118   :  { %v392_v51 = vmax.f32 %v341_v35, 0.0  ;;  %v391_v22 = vmax.f32 %v252_v26, 0.0  ;;  %v343_v58 = vpop.f32.mrb[19].mxu1 }
 0x119   :  { %v1897_v39 = vpack.c.bf16 %v390_v27, %v386_v8  ;;  %v393_v62 = vmax.f32 %v343_v58, 0.0 }
 0x11a   :  { %v1899_v31 = vpack.c.bf16 %v392_v51, %v388_v44  ;;  %v1901_v3 = vpack.c.bf16 %v391_v22, %v387_v18 }
 0x11b   :  { %v1903_v17 = vpack.c.bf16 %v393_v62, %v389_v53 }
 0x11c   :  { %v256_v54 = vpop.f32.mrb[20].mxu0  ;;  %510 = vmatprep.subr.bf16.mxu0 %v1901_v3 }
 0x11d   :  { %v394_v60 = vmax.f32 %v256_v54, 0.0  ;;  %v347_v4 = vpop.f32.mrb[20].mxu1  ;;  %611 = vmatprep.subr.bf16.mxu1 %v1903_v17  ;;  %v258_v40 = vpop.f32.mrb[21].mxu0  ;;  %511 = vmatpush1.bf16.msra.mxu0 %v1897_v39 }
 0x11e   :  { %v396_v13 = vmax.f32 %v347_v4, 0.0  ;;  %v395_v9 = vmax.f32 %v258_v40, 0.0  ;;  %v349_v8 = vpop.f32.mrb[21].mxu1  ;;  %612 = vmatpush1.bf16.msra.mxu1 %v1899_v31  ;;  %v260_v27 = vpop.f32.mrb[22].mxu0  ;;  %v2720_v4 = vmov 0   ;;  %v1433_v40 = vld [vmem:[%s2596_s2 + $0x8] sm:$0xff]  }
 0x11f   :  { %v431_v35 = vpack.c.bf16 %v394_v60, %v394_v60  ;;  %v397_v26 = vmax.f32 %v349_v8, 0.0  ;;  %v351_v44 = vpop.f32.mrb[22].mxu1  ;;  %v261_v18 = vpop.f32.mrb[23].mxu0  ;;  %v1432_v60 = vld [vmem:[%s2596_s2] sm:$0xff]   ;;  %v1437_v27 = vld [vmem:[%s2596_s2 + $0x28] sm:$0xff]  }
 0x120   :  { %v433_v51 = vpack.c.bf16 %v396_v13, %v396_v13  ;;  %v1909_v22 = vpack.c.bf16 %v395_v9, %v395_v9  ;;  %v352_v54 = vpop.f32.mrb[23].mxu1  ;;  %v1434_v13 = vld [vmem:[%s2596_s2 + $0x10] sm:$0xff]   ;;  %v1435_v9 = vld [vmem:[%s2596_s2 + $0x18] sm:$0xff]   ;;  %v1436_v8 = vld [vmem:[%s2596_s2 + $0x20] sm:$0xff]  }
 0x121   :  { %v1912_v58 = vsel %vm159_vm0, %v431_v35, 0  ;;  %v1914_v53 = vpack.c.bf16 %v397_v26, %v397_v26  ;;  %v1438_v35 = vld [vmem:[%s2596_s2 + $0x30] ss:$0 sps:$4 sm:$0xff]  }
 0x122   :  { %2718 = vst [vmem:[#allocation27_spill] sm:$0xff] %v1912_v58  ;;  %v1917_v62 = vsel %vm159_vm0, %v433_v51, 0  ;;  %1382 = vmatprep.subr.msk.bf16.mxu0 %vm159_vm0, %v1909_v22 }
 0x123   :  { %2719 = vst [vmem:[#allocation28_spill] sm:$0xff] %v1917_v62  ;;  %1390 = vmatprep.subr.msk.bf16.mxu1 %vm159_vm0, %v1914_v53  ;;  %513 = vmatpush1.bf16.msra.mxu0 %v1912_v58 }
 0x124   :  { %614 = vmatpush1.bf16.msra.mxu1 %v1917_v62 }
 0x126   :  { %1383 = vmatmul.mubr.msk.bf16.vlgmr.msra.gmra.mrb[24].mxu0 %vm468_vm2, %v1432_v60 }
 0x127   :  { %1391 = vmatmul.mubr.msk.bf16.vlgmr.msra.gmra.mrb[24].mxu1 %vm468_vm2, %v1432_v60  ;;  %544 = vmatprep.mubr.bf16.mxu0 %v2720_v4 }
 0x128   :  { %645 = vmatprep.mubr.bf16.mxu1 %v2720_v4 }
 0x12e   :  { %1384 = vmatmul.mubr.msk.bf16.gmra.mrb[28].mxu0 %vm468_vm2, %v1433_v40 }
 0x12f   :  { %1392 = vmatmul.mubr.msk.bf16.gmra.mrb[28].mxu1 %vm468_vm2, %v1433_v40  ;;  %554 = vmatprep.mubr.bf16.mxu0 %v2720_v4 }
 0x130   :  { %655 = vmatprep.mubr.bf16.mxu1 %v2720_v4 }
 0x136   :  { %1385 = vmatmul.mubr.msk.bf16.gmra.mrb[32].mxu0 %vm468_vm2, %v1434_v13 }
 0x137   :  { %1393 = vmatmul.mubr.msk.bf16.gmra.mrb[32].mxu1 %vm468_vm2, %v1434_v13  ;;  %564 = vmatprep.mubr.bf16.mxu0 %v2720_v4 }
 0x138   :  { %665 = vmatprep.mubr.bf16.mxu1 %v2720_v4 }
 0x13e   :  { %1386 = vmatmul.mubr.msk.bf16.gmra.mrb[36].mxu0 %vm468_vm2, %v1435_v9 }
 0x13f   :  { %1394 = vmatmul.mubr.msk.bf16.gmra.mrb[36].mxu1 %vm468_vm2, %v1435_v9  ;;  %574 = vmatprep.mubr.bf16.mxu0 %v2720_v4 }
 0x140   :  { %675 = vmatprep.mubr.bf16.mxu1 %v2720_v4 }
 0x146   :  { %1387 = vmatmul.mubr.msk.bf16.gmra.mrb[40].mxu0 %vm468_vm2, %v1436_v8 }
 0x147   :  { %1395 = vmatmul.mubr.msk.bf16.gmra.mrb[40].mxu1 %vm468_vm2, %v1436_v8  ;;  %584 = vmatprep.mubr.bf16.mxu0 %v2720_v4 }
 0x148   :  { %685 = vmatprep.mubr.bf16.mxu1 %v2720_v4 }
 0x14e   :  { %1388 = vmatmul.mubr.msk.bf16.gmra.mrb[44].mxu0 %vm468_vm2, %v1437_v27 }
 0x14f   :  { %1396 = vmatmul.mubr.msk.bf16.gmra.mrb[44].mxu1 %vm468_vm2, %v1437_v27  ;;  %594 = vmatprep.mubr.bf16.mxu0 %v2720_v4 }
 0x150   :  { %695 = vmatprep.mubr.bf16.mxu1 %v2720_v4 }
 0x156   :  { %1389 = vmatmul.mubr.msk.bf16.gmra.mrb[48].mxu0 %vm468_vm2, %v1438_v35 }
 0x157   :  { %1397 = vmatmul.mubr.msk.bf16.gmra.mrb[48].mxu1 %vm468_vm2, %v1438_v35  ;;  %884 = vmatprep.mubr.bf16.mxu0 %v2720_v4 }
 0x158   :  { %925 = vmatprep.mubr.bf16.mxu1 %v2720_v4 }
 0x1f9   :  { %v536_v26 = vpop.f32.mrb[24].mxu0 }
 0x1fa   :  { %v637_v44 = vpop.f32.mrb[24].mxu1  ;;  %v538_v18 = vpop.f32.mrb[25].mxu0  ;;  %v1978_v40 = vadd.f32 %v536_v26, %v1504_v6 }
 0x1fb   :  { %v1975_v51 = vadd.f32 %v538_v18, %v1480_v0  ;;  %v639_v54 = vpop.f32.mrb[25].mxu1  ;;  %v540_v60 = vpop.f32.mrb[26].mxu0  ;;  %v1987_v35 = vadd.f32 %v637_v44, %v1518_v10 }
 0x1fc   :  { %v1981_v13 = vadd.f32 %v639_v54, %v1490_v2  ;;  %v1984_v9 = vadd.f32 %v540_v60, %v1509_v7  ;;  %v641_v8 = vpop.f32.mrb[26].mxu1  ;;  %v542_v27 = vpop.f32.mrb[27].mxu0  ;;  %v2638_v10 = vmax.f32 %v1978_v40, 0.0 }
 0x1fd   :  { %2721 = vst [vmem:[#allocation29_spill] sm:$0xff] %v1975_v51  ;;  %v1990_v62 = vadd.f32 %v641_v8, %v1523_v11  ;;  %v1993_v0 = vadd.f32 %v542_v27, %v1485_v1  ;;  %v643_v18 = vpop.f32.mrb[27].mxu1  ;;  %v2635_v7 = vmax.f32 %v1975_v51, 0.0  ;;  %v2648_v1 = vmax.f32 %v1987_v35, 0.0 }
 0x1fe   :  { %v2637_v6 = vmax.f32 %v1984_v9, 0.0  ;;  %v1997_v2 = vadd.f32 %v643_v18, %v1499_v5  ;;  %v2640_v11 = vmax.f32 %v1981_v13, 0.0 }
 0x1ff   :  { %2722 = vst [vmem:[#allocation30_spill] sm:$0xff] %v1993_v0  ;;  %v2634_v54 = vmax.f32 %v1993_v0, 0.0  ;;  %v2724_v51 = vmax.f32 %v1990_v62, 0.0 }
 0x200   :  { %2723 = vst [vmem:[#allocation31_spill] sm:$0xff] %v1997_v2  ;;  %v2639_v44 = vmax.f32 %v1997_v2, 0.0  ;;  %v809_v8 = vpack.c.bf16 %v2637_v6, %v2638_v10 }
 0x201   :  { %v810_v5 = vpack.c.bf16 %v2634_v54, %v2635_v7  ;;  %v546_v60 = vpop.f32.mrb[28].mxu0  ;;  %v811_v58 = vpack.c.bf16 %v2724_v51, %v2648_v1 }
 0x202   :  { %v812_v27 = vpack.c.bf16 %v2639_v44, %v2640_v11  ;;  %v647_v18 = vpop.f32.mrb[28].mxu1  ;;  %v548_v26 = vpop.f32.mrb[29].mxu0  ;;  %v2026_v6 = vadd.f32 %v546_v60, %v1554_v19 }
 0x203   :  { %v2023_v54 = vadd.f32 %v548_v26, %v1528_v12  ;;  %v649_v7 = vpop.f32.mrb[29].mxu1  ;;  %v550_v0 = vpop.f32.mrb[30].mxu0  ;;  %852 = vmatprep.subr.bf16.mxu0 %v810_v5  ;;  %v2035_v51 = vadd.f32 %v647_v18, %v1564_v21 }
 0x204   :  { %v2029_v10 = vadd.f32 %v649_v7, %v1540_v15  ;;  %v2032_v44 = vadd.f32 %v550_v0, %v1559_v20  ;;  %v651_v11 = vpop.f32.mrb[30].mxu1  ;;  %893 = vmatprep.subr.bf16.mxu1 %v812_v27  ;;  %v552_v2 = vpop.f32.mrb[31].mxu0  ;;  %853 = vmatpush1.bf16.msra.mxu0 %v809_v8  ;;  %v2645_v5 = vmax.f32 %v2026_v6, 0.0 }
 0x205   :  { %v2038_v12 = vadd.f32 %v651_v11, %v1571_v23  ;;  %v2041_v26 = vadd.f32 %v552_v2, %v1535_v14  ;;  %v653_v19 = vpop.f32.mrb[31].mxu1  ;;  %894 = vmatpush1.bf16.msra.mxu1 %v811_v58  ;;  %v2643_v0 = vmax.f32 %v2023_v54, 0.0  ;;  %v2656_v2 = vmax.f32 %v2035_v51, 0.0 }
 0x206   :  { %v2644_v15 = vmax.f32 %v2032_v44, 0.0  ;;  %v2045_v20 = vadd.f32 %v653_v19, %v1545_v16  ;;  %v2647_v23 = vmax.f32 %v2029_v10, 0.0 }
 0x207   :  { %v2649_v7 = vmax.f32 %v2038_v12, 0.0  ;;  %v2642_v21 = vmax.f32 %v2041_v26, 0.0 }
 0x208   :  { %v2646_v14 = vmax.f32 %v2045_v20, 0.0  ;;  %v813_v11 = vpack.c.bf16 %v2644_v15, %v2645_v5 }
 0x209   :  { %v814_v16 = vpack.c.bf16 %v2642_v21, %v2643_v0  ;;  %v556_v58 = vpop.f32.mrb[32].mxu0  ;;  %v815_v18 = vpack.c.bf16 %v2649_v7, %v2656_v2 }
 0x20a   :  { %v816_v60 = vpack.c.bf16 %v2646_v14, %v2647_v23  ;;  %v657_v8 = vpop.f32.mrb[32].mxu1  ;;  %v558_v27 = vpop.f32.mrb[33].mxu0  ;;  %v2074_v15 = vadd.f32 %v556_v58, %v1600_v30 }
 0x20b   :  { %v2071_v19 = vadd.f32 %v558_v27, %v1576_v24  ;;  %v659_v21 = vpop.f32.mrb[33].mxu1  ;;  %v560_v0 = vpop.f32.mrb[34].mxu0  ;;  %854 = vmatprep.subr.bf16.mxu0 %v814_v16  ;;  %v2083_v7 = vadd.f32 %v657_v8, %v1612_v33 }
 0x20c   :  { %v2077_v5 = vadd.f32 %v659_v21, %v1590_v28  ;;  %v2080_v14 = vadd.f32 %v560_v0, %v1607_v32  ;;  %v661_v23 = vpop.f32.mrb[34].mxu1  ;;  %895 = vmatprep.subr.bf16.mxu1 %v816_v60  ;;  %v562_v1 = vpop.f32.mrb[35].mxu0  ;;  %855 = vmatpush1.bf16.msra.mxu0 %v813_v11  ;;  %v2653_v58 = vmax.f32 %v2074_v15, 0.0 }
 0x20d   :  { %v2086_v24 = vadd.f32 %v661_v23, %v1617_v34  ;;  %v2089_v16 = vadd.f32 %v562_v1, %v1581_v25  ;;  %v663_v30 = vpop.f32.mrb[35].mxu1  ;;  %896 = vmatpush1.bf16.msra.mxu1 %v815_v18  ;;  %v2651_v0 = vmax.f32 %v2071_v19, 0.0  ;;  %v2664_v1 = vmax.f32 %v2083_v7, 0.0 }
 0x20e   :  { %v2652_v28 = vmax.f32 %v2080_v14, 0.0  ;;  %v2093_v32 = vadd.f32 %v663_v30, %v1595_v29  ;;  %v2655_v34 = vmax.f32 %v2077_v5, 0.0 }
 0x20f   :  { %v2657_v21 = vmax.f32 %v2086_v24, 0.0  ;;  %v2650_v33 = vmax.f32 %v2089_v16, 0.0 }
 0x210   :  { %v2654_v25 = vmax.f32 %v2093_v32, 0.0  ;;  %v817_v11 = vpack.c.bf16 %v2652_v28, %v2653_v58 }
 0x211   :  { %v818_v29 = vpack.c.bf16 %v2650_v33, %v2651_v0  ;;  %v566_v23 = vpop.f32.mrb[36].mxu0  ;;  %v819_v18 = vpack.c.bf16 %v2657_v21, %v2664_v1 }
 0x212   :  { %v820_v60 = vpack.c.bf16 %v2654_v25, %v2655_v34  ;;  %v667_v8 = vpop.f32.mrb[36].mxu1  ;;  %v568_v27 = vpop.f32.mrb[37].mxu0  ;;  %v2122_v28 = vadd.f32 %v566_v23, %v1648_v42 }
 0x213   :  { %v2119_v30 = vadd.f32 %v568_v27, %v1624_v36  ;;  %v669_v33 = vpop.f32.mrb[37].mxu1  ;;  %v570_v0 = vpop.f32.mrb[38].mxu0  ;;  %856 = vmatprep.subr.bf16.mxu0 %v818_v29  ;;  %v2131_v21 = vadd.f32 %v667_v8, %v1660_v45 }
 0x214   :  { %v2125_v58 = vadd.f32 %v669_v33, %v1634_v38  ;;  %v2128_v25 = vadd.f32 %v570_v0, %v1653_v43  ;;  %v671_v34 = vpop.f32.mrb[38].mxu1  ;;  %897 = vmatprep.subr.bf16.mxu1 %v820_v60  ;;  %v572_v2 = vpop.f32.mrb[39].mxu0  ;;  %857 = vmatpush1.bf16.msra.mxu0 %v817_v11  ;;  %v2661_v23 = vmax.f32 %v2122_v28, 0.0 }
 0x215   :  { %v2134_v36 = vadd.f32 %v671_v34, %v1665_v46  ;;  %v2137_v29 = vadd.f32 %v572_v2, %v1629_v37  ;;  %v673_v42 = vpop.f32.mrb[39].mxu1  ;;  %898 = vmatpush1.bf16.msra.mxu1 %v819_v18  ;;  %v2659_v0 = vmax.f32 %v2119_v30, 0.0  ;;  %v2672_v2 = vmax.f32 %v2131_v21, 0.0 }
 0x216   :  { %v2660_v38 = vmax.f32 %v2128_v25, 0.0  ;;  %v2141_v43 = vadd.f32 %v673_v42, %v1643_v41  ;;  %v2663_v46 = vmax.f32 %v2125_v58, 0.0 }
 0x217   :  { %v2665_v33 = vmax.f32 %v2134_v36, 0.0  ;;  %v2658_v45 = vmax.f32 %v2137_v29, 0.0 }
 0x218   :  { %v2662_v37 = vmax.f32 %v2141_v43, 0.0  ;;  %v821_v11 = vpack.c.bf16 %v2660_v38, %v2661_v23 }
 0x219   :  { %v822_v41 = vpack.c.bf16 %v2658_v45, %v2659_v0  ;;  %v576_v34 = vpop.f32.mrb[40].mxu0  ;;  %v823_v18 = vpack.c.bf16 %v2665_v33, %v2672_v2 }
 0x21a   :  { %v824_v60 = vpack.c.bf16 %v2662_v37, %v2663_v46  ;;  %v677_v8 = vpop.f32.mrb[40].mxu1  ;;  %v578_v27 = vpop.f32.mrb[41].mxu0  ;;  %v2170_v38 = vadd.f32 %v576_v34, %v1692_v52 }
 0x21b   :  { %v2167_v42 = vadd.f32 %v578_v27, %v1670_v47  ;;  %v679_v45 = vpop.f32.mrb[41].mxu1  ;;  %v580_v0 = vpop.f32.mrb[42].mxu0  ;;  %858 = vmatprep.subr.bf16.mxu0 %v822_v41  ;;  %v2179_v33 = vadd.f32 %v677_v8, %v1706_v56 }
 0x21c   :  { %v2173_v23 = vadd.f32 %v679_v45, %v1680_v49  ;;  %v2176_v37 = vadd.f32 %v580_v0, %v1701_v55  ;;  %v681_v46 = vpop.f32.mrb[42].mxu1  ;;  %899 = vmatprep.subr.bf16.mxu1 %v824_v60  ;;  %v582_v1 = vpop.f32.mrb[43].mxu0  ;;  %859 = vmatpush1.bf16.msra.mxu0 %v821_v11  ;;  %v2669_v34 = vmax.f32 %v2170_v38, 0.0 }
 0x21d   :  { %v2182_v47 = vadd.f32 %v681_v46, %v1711_v57  ;;  %v2185_v41 = vadd.f32 %v582_v1, %v1675_v48  ;;  %v683_v52 = vpop.f32.mrb[43].mxu1  ;;  %900 = vmatpush1.bf16.msra.mxu1 %v823_v18  ;;  %v2667_v0 = vmax.f32 %v2167_v42, 0.0  ;;  %v2675_v1 = vmax.f32 %v2179_v33, 0.0 }
 0x21e   :  { %2725 = vst [vmem:[#allocation32_spill] sm:$0xff] %v2176_v37  ;;  %v2668_v49 = vmax.f32 %v2176_v37, 0.0  ;;  %v2189_v55 = vadd.f32 %v683_v52, %v1685_v50  ;;  %v2671_v57 = vmax.f32 %v2173_v23, 0.0 }
 0x21f   :  { %2726 = vst [vmem:[#allocation33_spill] sm:$0xff] %v2182_v47  ;;  %2727 = vst [vmem:[#allocation34_spill] sm:$0xff] %v2185_v41  ;;  %v2674_v45 = vmax.f32 %v2182_v47, 0.0  ;;  %v2666_v56 = vmax.f32 %v2185_v41, 0.0 }
 0x220   :  { %2728 = vst [vmem:[#allocation35_spill] sm:$0xff] %v2189_v55  ;;  %v2670_v48 = vmax.f32 %v2189_v55, 0.0  ;;  %v825_v11 = vpack.c.bf16 %v2668_v49, %v2669_v34 }
 0x221   :  { %v826_v50 = vpack.c.bf16 %v2666_v56, %v2667_v0  ;;  %v586_v46 = vpop.f32.mrb[44].mxu0  ;;  %v827_v18 = vpack.c.bf16 %v2674_v45, %v2675_v1  ;;  %v2734_v45 = vld [vmem:[#allocation5_spill] sm:$0xff] }
 0x222   :  { %v828_v60 = vpack.c.bf16 %v2670_v48, %v2671_v57  ;;  %v687_v8 = vpop.f32.mrb[44].mxu1  ;;  %v588_v27 = vpop.f32.mrb[45].mxu0  ;;  %v2218_v49 = vadd.f32 %v586_v46, %v1738_v63  ;;  %v2732_v48 = vld [vmem:[#allocation4_spill] sm:$0xff] }
 0x223   :  { %v2215_v52 = vadd.f32 %v588_v27, %v1718_v59  ;;  %v689_v56 = vpop.f32.mrb[45].mxu1  ;;  %v590_v0 = vpop.f32.mrb[46].mxu0  ;;  %860 = vmatprep.subr.bf16.mxu0 %v826_v50  ;;  %v2227_v1 = vadd.f32 %v687_v8, %v2734_v45  ;;  %v2736_v59 = vld [vmem:[#allocation6_spill] sm:$0xff] }
 0x224   :  { %2730 = vst [vmem:[#allocation37_spill] sm:$0xff] %v2218_v49  ;;  %v2221_v34 = vadd.f32 %v689_v56, %v1728_v61  ;;  %v2224_v57 = vadd.f32 %v590_v0, %v2732_v48  ;;  %v691_v2 = vpop.f32.mrb[46].mxu1  ;;  %901 = vmatprep.subr.bf16.mxu1 %v828_v60  ;;  %v592_v55 = vpop.f32.mrb[47].mxu0  ;;  %861 = vmatpush1.bf16.msra.mxu0 %v825_v11  ;;  %v2738_v50 = vld [vmem:[#allocation2_spill] sm:$0xff]  ;;  %v2740_v56 = vld [vmem:[#allocation3_spill] sm:$0xff]  ;;  %v2686_v11 = vmax.f32 %v2218_v49, 0.0 }
 0x225   :  { %2729 = vst [vmem:[#allocation36_spill] sm:$0xff] %v2215_v52  ;;  %2735 = vst [vmem:[#allocation5_spill] sm:$0xff] %v2227_v1  ;;  %v2230_v27 = vadd.f32 %v691_v2, %v2736_v59  ;;  %v2233_v41 = vadd.f32 %v592_v55, %v2738_v50  ;;  %v693_v63 = vpop.f32.mrb[47].mxu1  ;;  %902 = vmatpush1.bf16.msra.mxu1 %v827_v18  ;;  %v2680_v48 = vmax.f32 %v2215_v52, 0.0  ;;  %v2743_v52 = vmax.f32 %v2227_v1, 0.0  ;;  %v2746_v49 = vld [vmem:[#allocation7_spill] sm:$0xff] }
 0x226   :  { %2731 = vst [vmem:[#allocation38_spill] sm:$0xff] %v2221_v34  ;;  %2733 = vst [vmem:[#allocation4_spill] sm:$0xff] %v2224_v57  ;;  %v2685_v61 = vmax.f32 %v2224_v57, 0.0  ;;  %v2237_v0 = vadd.f32 %v693_v63, %v2740_v56  ;;  %v2690_v2 = vmax.f32 %v2221_v34, 0.0  ;;  %v2742_v63 = vld [vmem:[#allocation9_spill] sm:$0xff]  ;;  %v2747_v34 = vld [vmem:[#allocation8_spill] sm:$0xff] }
 0x227   :  { %2737 = vst [vmem:[#allocation6_spill] sm:$0xff] %v2230_v27  ;;  %2739 = vst [vmem:[#allocation2_spill] sm:$0xff] %v2233_v41  ;;  %v2679_v45 = vmax.f32 %v2233_v41, 0.0  ;;  %v2744_v41 = vmax.f32 %v2230_v27, 0.0 }
 0x228   :  { %2741 = vst [vmem:[#allocation3_spill] sm:$0xff] %v2237_v0  ;;  %v2689_v55 = vmax.f32 %v2237_v0, 0.0  ;;  %v829_v59 = vpack.c.bf16 %v2685_v61, %v2686_v11 }
 0x229   :  { %v830_v8 = vpack.c.bf16 %v2679_v45, %v2680_v48  ;;  %v596_v18 = vpop.f32.mrb[48].mxu0  ;;  %v831_v45 = vpack.c.bf16 %v2744_v41, %v2743_v52  ;;  %v2745_v48 = vld [vmem:[#allocation10_spill] sm:$0xff] }
 0x22a   :  { %v832_v50 = vpack.c.bf16 %v2689_v55, %v2690_v2  ;;  %v752_v56 = vadd.f32 %v596_v18, %v2742_v63  ;;  %v697_v46 = vpop.f32.mrb[48].mxu1  ;;  %v598_v60 = vpop.f32.mrb[49].mxu0 }
 0x22b   :  { %v754_v47 = vadd.f32 %v697_v46, %v2745_v48  ;;  %v753_v37 = vadd.f32 %v598_v60, %v2746_v49  ;;  %v699_v57 = vpop.f32.mrb[49].mxu1  ;;  %v600_v61 = vpop.f32.mrb[50].mxu0  ;;  %862 = vmatprep.subr.bf16.mxu0 %v830_v8  ;;  %v2748_v8 = vld [vmem:[#allocation13_spill] sm:$0xff] }
 0x22c   :  { %v804_v11 = vmax.f32 %v752_v56, 0.0  ;;  %v755_v0 = vadd.f32 %v699_v57, %v2747_v34  ;;  %v701_v55 = vpop.f32.mrb[50].mxu1  ;;  %903 = vmatprep.subr.bf16.mxu1 %v832_v50  ;;  %v601_v18 = vpop.f32.mrb[51].mxu0  ;;  %863 = vmatpush1.bf16.msra.mxu0 %v829_v59  ;;  %v2749_v59 = vmax.f32 %v2748_v8, 0.0  ;;  %v2767_v8 = vld [vmem:[#allocation24_spill] sm:$0xff] }
 0x22d   :  { %v806_v63 = vmax.f32 %v754_v47, 0.0  ;;  %v805_v2 = vmax.f32 %v753_v37, 0.0  ;;  %v702_v1 = vpop.f32.mrb[51].mxu1  ;;  %904 = vmatpush1.bf16.msra.mxu1 %v831_v45  ;;  %v808_v37 = vld [vmem:[%s2597_s3] sm:$0xf]  ;;  %v2750_v18 = vld [vmem:[#allocation11_spill] sm:$0xff] }
 0x22e   :  { %v833_v27 = vpack.c.bf16 %v804_v11, %v804_v11  ;;  %v807_v41 = vmax.f32 %v755_v0, 0.0 }
 0x22f   :  { %v835_v52 = vpack.c.bf16 %v806_v63, %v806_v63  ;;  %v834_v48 = vpack.c.bf16 %v805_v2, %v805_v2  ;;  %v2751_v63 = vmax.f32 %v2750_v18, 0.0 }
 0x230   :  { %v836_v46 = vpack.c.bf16 %v807_v41, %v807_v41  ;;  %v841_v49 = vsel %vm159_vm0, %v833_v27, 0 }
 0x231   :  { %1398 = vmatprep.subr.msk.bf16.mxu0 %vm159_vm0, %v834_v48  ;;  %v847_v61 = vsel %vm159_vm0, %v835_v52, 0  ;;  %v2752_v52 = vld [vmem:[#allocation14_spill] sm:$0xff] }
 0x232   :  { %1400 = vmatprep.subr.msk.bf16.mxu1 %vm159_vm0, %v836_v46  ;;  %865 = vmatpush1.bf16.msra.mxu0 %v841_v49  ;;  %v2753_v48 = vmax.f32 %v2752_v52, 0.0  ;;  %v2754_v49 = vld [vmem:[#allocation12_spill] sm:$0xff] }
 0x233   :  { %906 = vmatpush1.bf16.msra.mxu1 %v847_v61  ;;  %v2755_v61 = vmax.f32 %v2754_v49, 0.0 }
 0x235   :  { %1399 = vmatmul.mubr.msk.bf16.vlgmr.msra.gmra.mrb[52].mxu0 %vm140_vm1, %v808_v37 }
 0x236   :  { %1401 = vmatmul.mubr.msk.bf16.vlgmr.msra.gmra.mrb[52].mxu1 %vm140_vm1, %v808_v37  ;;  %1041 = vmatprep.mubr.bf16.mxu0 %v2720_v4 }
 0x237   :  { %1140 = vmatprep.mubr.bf16.mxu1 %v2720_v4 }
 0x308   :  { %v886_v47 = vpop.f32.mrb[52].mxu0 }
 0x309   :  { %v934_v34 = vmax.f32 %v886_v47, 0.0  ;;  %v927_v57 = vpop.f32.mrb[52].mxu1  ;;  %v888_v1 = vpop.f32.mrb[53].mxu0  ;;  %v2756_v47 = vld [vmem:[#allocation17_spill] sm:$0xff] }
 0x30a   :  { %v936_v27 = vmax.f32 %v927_v57, 0.0  ;;  %v935_v0 = vmax.f32 %v888_v1, 0.0  ;;  %v929_v45 = vpop.f32.mrb[53].mxu1  ;;  %v890_v11 = vpop.f32.mrb[54].mxu0  ;;  %v2757_v57 = vld [vmem:[#allocation18_spill] sm:$0xff]  ;;  %v2758_v1 = vld [vmem:[#allocation15_spill] sm:$0xff] }
 0x30b   :  { %v937_v2 = vmax.f32 %v929_v45, 0.0  ;;  %v931_v55 = vpop.f32.mrb[54].mxu1  ;;  %v891_v60 = vpop.f32.mrb[55].mxu0  ;;  %v951_v41 = vpack.c.bf16 %v2751_v63, %v934_v34  ;;  %v2760_v45 = vld [vmem:[#allocation21_spill] sm:$0xff]  ;;  %v2761_v34 = vld [vmem:[#allocation22_spill] sm:$0xff]  ;;  %v2762_v11 = vld [vmem:[#allocation19_spill] sm:$0xff] }
 0x30c   :  { %v952_v50 = vpack.c.bf16 %v2749_v59, %v935_v0  ;;  %v932_v56 = vpop.f32.mrb[55].mxu1  ;;  %v953_v37 = vpack.c.bf16 %v2755_v61, %v936_v27  ;;  %v2759_v0 = vld [vmem:[#allocation16_spill] sm:$0xff]  ;;  %v2764_v27 = vld [vmem:[#allocation25_spill] sm:$0xff]  ;;  %v2765_v55 = vld [vmem:[#allocation26_spill] sm:$0xff]  ;;  %v2770_v63 = vmax.f32 %v1978_v40, 0.0 }
 0x30d   :  { %v954_v46 = vpack.c.bf16 %v2753_v48, %v937_v2  ;;  %v2763_v2 = vld [vmem:[#allocation20_spill] sm:$0xff]  ;;  %v2766_v60 = vld [vmem:[#allocation23_spill] sm:$0xff]  ;;  %v1439_v59 = vld [vmem:[%s2598_s4] sm:$0xff]  }
 0x30e   :  { %1009 = vmatprep.subr.bf16.mxu0 %v952_v50  ;;  %v2768_v50 = vld [vmem:[#allocation27_spill] sm:$0xff]  ;;  %v2769_v56 = vld [vmem:[#allocation28_spill] sm:$0xff]  ;;  %v2772_v61 = vld [vmem:[#allocation29_spill] sm:$0xff] }
 0x30f   :  { %1108 = vmatprep.subr.bf16.mxu1 %v954_v46  ;;  %1010 = vmatpush1.bf16.msra.mxu0 %v951_v41  ;;  %v2771_v46 = vmax.f32 %v1987_v35, 0.0 }
 0x310   :  { %1109 = vmatpush1.bf16.msra.mxu1 %v953_v37  ;;  %1011 = vmatprep.subr.bf16.mxu0 %v2756_v47  ;;  %v2773_v37 = vmax.f32 %v2772_v61, 0.0 }
 0x311   :  { %1110 = vmatprep.subr.bf16.mxu1 %v2757_v57 }
 0x313   :  { %1012 = vmatpush1.bf16.msra.mxu0 %v2758_v1 }
 0x314   :  { %1111 = vmatpush1.bf16.msra.mxu1 %v2759_v0  ;;  %1013 = vmatprep.subr.bf16.mxu0 %v2760_v45  ;;  %v2774_v0 = vmax.f32 %v1981_v13, 0.0 }
 0x315   :  { %1112 = vmatprep.subr.bf16.mxu1 %v2761_v34  ;;  %v2775_v34 = vmax.f32 %v1984_v9, 0.0 }
 0x317   :  { %1014 = vmatpush1.bf16.msra.mxu0 %v2762_v11 }
 0x318   :  { %1113 = vmatpush1.bf16.msra.mxu1 %v2763_v2  ;;  %1015 = vmatprep.subr.bf16.mxu0 %v2764_v27 }
 0x319   :  { %1114 = vmatprep.subr.bf16.mxu1 %v2765_v55 }
 0x31b   :  { %1016 = vmatpush1.bf16.msra.mxu0 %v2766_v60  ;;  %v2776_v60 = vmax.f32 %v1990_v62, 0.0 }
 0x31c   :  { %1115 = vmatpush1.bf16.msra.mxu1 %v2767_v8  ;;  %1017 = vmatprep.subr.bf16.mxu0 %v1901_v3  ;;  %v1442_v3 = vld [vmem:[%s2598_s4 + $0x18] sm:$0xff]   ;;  %v2777_v8 = vld [vmem:[#allocation30_spill] sm:$0xff] }
 0x31d   :  { %1116 = vmatprep.subr.bf16.mxu1 %v1903_v17  ;;  %v1441_v17 = vld [vmem:[%s2598_s4 + $0x10] sm:$0xff]  }
 0x31f   :  { %1018 = vmatpush1.bf16.msra.mxu0 %v1897_v39  ;;  %v1443_v39 = vld [vmem:[%s2598_s4 + $0x20] sm:$0xff]  }
 0x320   :  { %1117 = vmatpush1.bf16.msra.mxu1 %v1899_v31  ;;  %1409 = vmatprep.subr.msk.bf16.mxu0 %vm159_vm0, %v1909_v22  ;;  %v1440_v31 = vld [vmem:[%s2598_s4 + $0x8] sm:$0xff]  }
 0x321   :  { %1417 = vmatprep.subr.msk.bf16.mxu1 %vm159_vm0, %v1914_v53  ;;  %v1444_v22 = vld [vmem:[%s2598_s4 + $0x28] sm:$0xff]   ;;  %v1445_v53 = vld [vmem:[%s2598_s4 + $0x30] ss:$0 sps:$4 sm:$0xff]  }
 0x323   :  { %1020 = vmatpush1.bf16.msra.mxu0 %v2768_v50 }
 0x324   :  { %1119 = vmatpush1.bf16.msra.mxu1 %v2769_v56 }
 0x326   :  { %1410 = vmatmul.mubr.msk.bf16.vlgmr.msra.gmra.mrb[56].mxu0 %vm468_vm2, %v1439_v59 }
 0x327   :  { %1418 = vmatmul.mubr.msk.bf16.vlgmr.msra.gmra.mrb[56].mxu1 %vm468_vm2, %v1439_v59  ;;  %1051 = vmatprep.mubr.bf16.mxu0 %v2720_v4  ;;  %v2778_v59 = vmax.f32 %v2777_v8, 0.0 }
 0x328   :  { %1150 = vmatprep.mubr.bf16.mxu1 %v2720_v4 }
 0x32e   :  { %1411 = vmatmul.mubr.msk.bf16.gmra.mrb[60].mxu0 %vm468_vm2, %v1440_v31 }
 0x32f   :  { %1419 = vmatmul.mubr.msk.bf16.gmra.mrb[60].mxu1 %vm468_vm2, %v1440_v31  ;;  %1061 = vmatprep.mubr.bf16.mxu0 %v2720_v4 }
 0x330   :  { %1160 = vmatprep.mubr.bf16.mxu1 %v2720_v4 }
 0x336   :  { %1412 = vmatmul.mubr.msk.bf16.gmra.mrb[64].mxu0 %vm468_vm2, %v1441_v17 }
 0x337   :  { %1420 = vmatmul.mubr.msk.bf16.gmra.mrb[64].mxu1 %vm468_vm2, %v1441_v17  ;;  %1071 = vmatprep.mubr.bf16.mxu0 %v2720_v4  ;;  %v2779_v17 = vld [vmem:[#allocation31_spill] sm:$0xff] }
 0x338   :  { %1170 = vmatprep.mubr.bf16.mxu1 %v2720_v4  ;;  %v2780_v9 = vmax.f32 %v2779_v17, 0.0 }
 0x33e   :  { %1413 = vmatmul.mubr.msk.bf16.gmra.mrb[68].mxu0 %vm468_vm2, %v1442_v3 }
 0x33f   :  { %1421 = vmatmul.mubr.msk.bf16.gmra.mrb[68].mxu1 %vm468_vm2, %v1442_v3  ;;  %1081 = vmatprep.mubr.bf16.mxu0 %v2720_v4 }
 0x340   :  { %1180 = vmatprep.mubr.bf16.mxu1 %v2720_v4 }
 0x346   :  { %1414 = vmatmul.mubr.msk.bf16.gmra.mrb[72].mxu0 %vm468_vm2, %v1443_v39 }
 0x347   :  { %1422 = vmatmul.mubr.msk.bf16.gmra.mrb[72].mxu1 %vm468_vm2, %v1443_v39  ;;  %1091 = vmatprep.mubr.bf16.mxu0 %v2720_v4 }
 0x348   :  { %1190 = vmatprep.mubr.bf16.mxu1 %v2720_v4 }
 0x34e   :  { %1415 = vmatmul.mubr.msk.bf16.gmra.mrb[76].mxu0 %vm468_vm2, %v1444_v22 }
 0x34f   :  { %1423 = vmatmul.mubr.msk.bf16.gmra.mrb[76].mxu1 %vm468_vm2, %v1444_v22  ;;  %1101 = vmatprep.mubr.bf16.mxu0 %v2720_v4 }
 0x350   :  { %1200 = vmatprep.mubr.bf16.mxu1 %v2720_v4 }
 0x356   :  { %1416 = vmatmul.mubr.msk.bf16.gmra.mrb[80].mxu0 %vm468_vm2, %v1445_v53 }
 0x357   :  { %1424 = vmatmul.mubr.msk.bf16.gmra.mrb[80].mxu1 %vm468_vm2, %v1445_v53 }
 0x3f9   :  { %v1043_v18 = vpop.f32.mrb[56].mxu0 }
 0x3fa   :  { %v1207_v41 = vadd.f32 %v1043_v18, %v2770_v63  ;;  %v1142_v52 = vpop.f32.mrb[56].mxu1  ;;  %v1045_v48 = vpop.f32.mrb[57].mxu0  ;;  %v2781_v18 = vmax.f32 %v2026_v6, 0.0 }
 0x3fb   :  { %v1209_v49 = vadd.f32 %v1142_v52, %v2771_v46  ;;  %v1208_v4 = vadd.f32 %v1045_v48, %v2773_v37  ;;  %v1144_v47 = vpop.f32.mrb[57].mxu1  ;;  %v1047_v57 = vpop.f32.mrb[58].mxu0  ;;  %v2782_v48 = vmax.f32 %v2035_v51, 0.0 }
 0x3fc   :  { %v1255_v1 = vmax.f32 %v1207_v41, 0.0  ;;  %v1210_v45 = vadd.f32 %v1144_v47, %v2774_v0  ;;  %v1211_v11 = vadd.f32 %v1047_v57, %v2775_v34  ;;  %v1146_v2 = vpop.f32.mrb[58].mxu1  ;;  %v1049_v40 = vpop.f32.mrb[59].mxu0  ;;  %v2784_v57 = vmax.f32 %v2029_v10, 0.0 }
 0x3fd   :  { %v1257_v27 = vmax.f32 %v1209_v49, 0.0  ;;  %v1256_v55 = vmax.f32 %v1208_v4, 0.0  ;;  %v1213_v35 = vadd.f32 %v1146_v2, %v2776_v60  ;;  %v1212_v50 = vadd.f32 %v1049_v40, %v2778_v59  ;;  %v1148_v56 = vpop.f32.mrb[59].mxu1 }
 0x3fe   :  { %1303 = vst [vmem:[%s2599_s5] sm:$0xff] %v1255_v1  ;;  %v1258_v13 = vmax.f32 %v1210_v45, 0.0  ;;  %v1259_v31 = vmax.f32 %v1211_v11, 0.0  ;;  %v1214_v3 = vadd.f32 %v1148_v56, %v2780_v9  ;;  %v2783_v49 = vmax.f32 %v2023_v54, 0.0 }
 0x3ff   :  { %1305 = vst [vmem:[%s2599_s5 + $0x10] sm:$0xff] %v1257_v27  ;;  %1304 = vst [vmem:[%s2599_s5 + $0x8] sm:$0xff] %v1256_v55  ;;  %v1261_v62 = vmax.f32 %v1213_v35, 0.0  ;;  %v1260_v39 = vmax.f32 %v1212_v50, 0.0  ;;  %v2785_v0 = vmax.f32 %v2032_v44, 0.0  ;;  %v2786_v40 = vmax.f32 %v2038_v12, 0.0 }
 0x400   :  { %1306 = vst [vmem:[%s2599_s5 + $0x18] sm:$0xff] %v1258_v13  ;;  %1307 = vst [vmem:[%s2599_s5 + $0x20] sm:$0xff] %v1259_v31  ;;  %v1262_v22 = vmax.f32 %v1214_v3, 0.0  ;;  %v2787_v27 = vmax.f32 %v2041_v26, 0.0  ;;  %v2788_v44 = vmax.f32 %v2045_v20, 0.0  ;;  %v2789_v59 = vmax.f32 %v2074_v15, 0.0 }
 0x401   :  { %1309 = vst [vmem:[%s2599_s5 + $0x30] sm:$0xff] %v1261_v62  ;;  %1308 = vst [vmem:[%s2599_s5 + $0x28] sm:$0xff] %v1260_v39  ;;  %v1053_v53 = vpop.f32.mrb[60].mxu0  ;;  %v2790_v31 = vmax.f32 %v2083_v7, 0.0  ;;  %v2791_v9 = vmax.f32 %v2071_v19, 0.0 }
 0x402   :  { %1310 = vst [vmem:[%s2599_s5 + $0x38] sm:$0xff] %v1262_v22  ;;  %v1215_v63 = vadd.f32 %v1053_v53, %v2781_v18  ;;  %v1152_v41 = vpop.f32.mrb[60].mxu1  ;;  %v1055_v52 = vpop.f32.mrb[61].mxu0  ;;  %v2792_v53 = vmax.f32 %v2077_v5, 0.0 }
 0x403   :  { %v1217_v46 = vadd.f32 %v1152_v41, %v2782_v48  ;;  %v1216_v61 = vadd.f32 %v1055_v52, %v2783_v49  ;;  %v1154_v37 = vpop.f32.mrb[61].mxu1  ;;  %v1057_v4 = vpop.f32.mrb[62].mxu0  ;;  %v2794_v49 = vmax.f32 %v2086_v24, 0.0 }
 0x404   :  { %v1263_v47 = vmax.f32 %v1215_v63, 0.0  ;;  %v1218_v1 = vadd.f32 %v1154_v37, %v2784_v57  ;;  %v1219_v45 = vadd.f32 %v1057_v4, %v2785_v0  ;;  %v1156_v34 = vpop.f32.mrb[62].mxu1  ;;  %v1059_v6 = vpop.f32.mrb[63].mxu0  ;;  %v2793_v63 = vmax.f32 %v2080_v14, 0.0 }
 0x405   :  { %v1265_v11 = vmax.f32 %v1217_v46, 0.0  ;;  %v1264_v2 = vmax.f32 %v1216_v61, 0.0  ;;  %v1221_v51 = vadd.f32 %v1156_v34, %v2786_v40  ;;  %v1220_v54 = vadd.f32 %v1059_v6, %v2787_v27  ;;  %v1158_v55 = vpop.f32.mrb[63].mxu1 }
 0x406   :  { %1311 = vst [vmem:[%s2599_s5 + $0x40] sm:$0xff] %v1263_v47  ;;  %v1266_v10 = vmax.f32 %v1218_v1, 0.0  ;;  %v1267_v60 = vmax.f32 %v1219_v45, 0.0  ;;  %v1222_v35 = vadd.f32 %v1158_v55, %v2788_v44  ;;  %v2795_v61 = vmax.f32 %v2089_v16, 0.0 }
 0x407   :  { %1313 = vst [vmem:[%s2599_s5 + $0x50] sm:$0xff] %v1265_v11  ;;  %1312 = vst [vmem:[%s2599_s5 + $0x48] sm:$0xff] %v1264_v2  ;;  %v1269_v12 = vmax.f32 %v1221_v51, 0.0  ;;  %v1268_v26 = vmax.f32 %v1220_v54, 0.0  ;;  %v2796_v14 = vmax.f32 %v2093_v32, 0.0  ;;  %v2797_v1 = vmax.f32 %v2122_v28, 0.0 }
 0x408   :  { %1314 = vst [vmem:[%s2599_s5 + $0x58] sm:$0xff] %v1266_v10  ;;  %1315 = vst [vmem:[%s2599_s5 + $0x60] sm:$0xff] %v1267_v60  ;;  %v1270_v20 = vmax.f32 %v1222_v35, 0.0  ;;  %v2798_v6 = vmax.f32 %v2131_v21, 0.0  ;;  %v2799_v2 = vmax.f32 %v2119_v30, 0.0  ;;  %v2800_v55 = vmax.f32 %v2125_v58, 0.0 }
 0x409   :  { %1317 = vst [vmem:[%s2599_s5 + $0x70] sm:$0xff] %v1269_v12  ;;  %1316 = vst [vmem:[%s2599_s5 + $0x68] sm:$0xff] %v1268_v26  ;;  %v1063_v8 = vpop.f32.mrb[64].mxu0  ;;  %v2801_v60 = vmax.f32 %v2128_v25, 0.0  ;;  %v2804_v25 = vmax.f32 %v2141_v43, 0.0 }
 0x40a   :  { %1318 = vst [vmem:[%s2599_s5 + $0x78] sm:$0xff] %v1270_v20  ;;  %v1223_v50 = vadd.f32 %v1063_v8, %v2789_v59  ;;  %v1162_v56 = vpop.f32.mrb[64].mxu1  ;;  %v1065_v13 = vpop.f32.mrb[65].mxu0  ;;  %v2802_v20 = vmax.f32 %v2134_v36, 0.0  ;;  %v2803_v8 = vmax.f32 %v2137_v29, 0.0 }
 0x40b   :  { %v1225_v17 = vadd.f32 %v1162_v56, %v2790_v31  ;;  %v1224_v3 = vadd.f32 %v1065_v13, %v2791_v9  ;;  %v1164_v62 = vpop.f32.mrb[65].mxu1  ;;  %v1067_v39 = vpop.f32.mrb[66].mxu0  ;;  %v2805_v31 = vmax.f32 %v2170_v38, 0.0 }
 0x40c   :  { %v1271_v22 = vmax.f32 %v1223_v50, 0.0  ;;  %v1226_v18 = vadd.f32 %v1164_v62, %v2792_v53  ;;  %v1227_v41 = vadd.f32 %v1067_v39, %v2793_v63  ;;  %v1166_v52 = vpop.f32.mrb[66].mxu1  ;;  %v1069_v15 = vpop.f32.mrb[67].mxu0  ;;  %v2806_v62 = vmax.f32 %v2179_v33, 0.0 }
 0x40d   :  { %v1273_v48 = vmax.f32 %v1225_v17, 0.0  ;;  %v1272_v46 = vmax.f32 %v1224_v3, 0.0  ;;  %v1229_v7 = vadd.f32 %v1166_v52, %v2794_v49  ;;  %v1228_v19 = vadd.f32 %v1069_v15, %v2795_v61  ;;  %v1168_v37 = vpop.f32.mrb[67].mxu1 }
 0x40e   :  { %1319 = vst [vmem:[%s2599_s5 + $0x80] sm:$0xff] %v1271_v22  ;;  %v1274_v5 = vmax.f32 %v1226_v18, 0.0  ;;  %v1275_v4 = vmax.f32 %v1227_v41, 0.0  ;;  %v1230_v47 = vadd.f32 %v1168_v37, %v2796_v14  ;;  %v2807_v22 = vmax.f32 %v2167_v42, 0.0  ;;  %v2811_v37 = vld [vmem:[#allocation33_spill] sm:$0xff] }
 0x40f   :  { %1321 = vst [vmem:[%s2599_s5 + $0x90] sm:$0xff] %v1273_v48  ;;  %1320 = vst [vmem:[%s2599_s5 + $0x88] sm:$0xff] %v1272_v46  ;;  %v1277_v24 = vmax.f32 %v1229_v7, 0.0  ;;  %v1276_v16 = vmax.f32 %v1228_v19, 0.0  ;;  %v2808_v52 = vmax.f32 %v2173_v23, 0.0  ;;  %v2809_v48 = vld [vmem:[#allocation32_spill] sm:$0xff] }
 0x410   :  { %1322 = vst [vmem:[%s2599_s5 + $0x98] sm:$0xff] %v1274_v5  ;;  %1323 = vst [vmem:[%s2599_s5 + $0xa0] sm:$0xff] %v1275_v4  ;;  %v1278_v32 = vmax.f32 %v1230_v47, 0.0  ;;  %v2810_v46 = vmax.f32 %v2809_v48, 0.0  ;;  %v2812_v5 = vmax.f32 %v2811_v37, 0.0  ;;  %v2813_v4 = vld [vmem:[#allocation34_spill] sm:$0xff] }
 0x411   :  { %1325 = vst [vmem:[%s2599_s5 + $0xb0] sm:$0xff] %v1277_v24  ;;  %1324 = vst [vmem:[%s2599_s5 + $0xa8] sm:$0xff] %v1276_v16  ;;  %v1073_v57 = vpop.f32.mrb[68].mxu0  ;;  %v2814_v14 = vmax.f32 %v2813_v4, 0.0  ;;  %v2815_v16 = vld [vmem:[#allocation35_spill] sm:$0xff] }
 0x412   :  { %1326 = vst [vmem:[%s2599_s5 + $0xb8] sm:$0xff] %v1278_v32  ;;  %v1231_v0 = vadd.f32 %v1073_v57, %v2797_v1  ;;  %v1172_v45 = vpop.f32.mrb[68].mxu1  ;;  %v1075_v34 = vpop.f32.mrb[69].mxu0  ;;  %v2816_v32 = vmax.f32 %v2815_v16, 0.0 }
 0x413   :  { %v1233_v11 = vadd.f32 %v1172_v45, %v2798_v6  ;;  %v1232_v40 = vadd.f32 %v1075_v34, %v2799_v2  ;;  %v1174_v51 = vpop.f32.mrb[69].mxu1  ;;  %v1077_v27 = vpop.f32.mrb[70].mxu0  ;;  %v2817_v6 = vld [vmem:[#allocation37_spill] sm:$0xff] }
 0x414   :  { %v1279_v54 = vmax.f32 %v1231_v0, 0.0  ;;  %v1234_v10 = vadd.f32 %v1174_v51, %v2800_v55  ;;  %v1235_v44 = vadd.f32 %v1077_v27, %v2801_v60  ;;  %v1176_v35 = vpop.f32.mrb[70].mxu1  ;;  %v1079_v28 = vpop.f32.mrb[71].mxu0  ;;  %v2819_v27 = vld [vmem:[#allocation5_spill] sm:$0xff] }
 0x415   :  { %v1281_v12 = vmax.f32 %v1233_v11, 0.0  ;;  %v1280_v26 = vmax.f32 %v1232_v40, 0.0  ;;  %v1237_v21 = vadd.f32 %v1176_v35, %v2802_v20  ;;  %v1236_v30 = vadd.f32 %v1079_v28, %v2803_v8  ;;  %v1178_v59 = vpop.f32.mrb[71].mxu1  ;;  %v2825_v8 = vld [vmem:[#allocation4_spill] sm:$0xff] }
 0x416   :  { %1327 = vst [vmem:[%s2599_s5 + $0xc0] sm:$0xff] %v1279_v54  ;;  %v1282_v58 = vmax.f32 %v1234_v10, 0.0  ;;  %v1283_v50 = vmax.f32 %v1235_v44, 0.0  ;;  %v1238_v56 = vadd.f32 %v1178_v59, %v2804_v25  ;;  %v2818_v11 = vmax.f32 %v2817_v6, 0.0  ;;  %v2821_v10 = vld [vmem:[#allocation36_spill] sm:$0xff] }
 0x417   :  { %1329 = vst [vmem:[%s2599_s5 + $0xd0] sm:$0xff] %v1281_v12  ;;  %1328 = vst [vmem:[%s2599_s5 + $0xc8] sm:$0xff] %v1280_v26  ;;  %v1285_v36 = vmax.f32 %v1237_v21, 0.0  ;;  %v1284_v29 = vmax.f32 %v1236_v30, 0.0  ;;  %v2820_v54 = vmax.f32 %v2819_v27, 0.0  ;;  %v2822_v60 = vmax.f32 %v2821_v10, 0.0 }
 0x418   :  { %1330 = vst [vmem:[%s2599_s5 + $0xd8] sm:$0xff] %v1282_v58  ;;  %1331 = vst [vmem:[%s2599_s5 + $0xe0] sm:$0xff] %v1283_v50  ;;  %v1286_v43 = vmax.f32 %v1238_v56, 0.0  ;;  %v2823_v26 = vld [vmem:[#allocation38_spill] sm:$0xff]  ;;  %v2826_v30 = vmax.f32 %v2825_v8, 0.0 }
 0x419   :  { %1333 = vst [vmem:[%s2599_s5 + $0xf0] sm:$0xff] %v1285_v36  ;;  %1332 = vst [vmem:[%s2599_s5 + $0xe8] sm:$0xff] %v1284_v29  ;;  %v1083_v13 = vpop.f32.mrb[72].mxu0  ;;  %v2824_v20 = vmax.f32 %v2823_v26, 0.0  ;;  %v2827_v36 = vld [vmem:[#allocation6_spill] sm:$0xff] }
 0x41a   :  { %1334 = vst [vmem:[%s2599_s5 + $0xf8] sm:$0xff] %v1286_v43  ;;  %v1239_v17 = vadd.f32 %v1083_v13, %v2805_v31  ;;  %v1182_v9 = vpop.f32.mrb[72].mxu1  ;;  %v1085_v3 = vpop.f32.mrb[73].mxu0  ;;  %v2828_v29 = vmax.f32 %v2827_v36, 0.0  ;;  %v2829_v13 = vld [vmem:[#allocation2_spill] sm:$0xff] }
 0x41b   :  { %v1241_v39 = vadd.f32 %v1182_v9, %v2806_v62  ;;  %v1240_v53 = vadd.f32 %v1085_v3, %v2807_v22  ;;  %v1184_v18 = vpop.f32.mrb[73].mxu1  ;;  %v1087_v63 = vpop.f32.mrb[74].mxu0  ;;  %v2830_v31 = vmax.f32 %v2829_v13, 0.0 }
 0x41c   :  { %v1287_v41 = vmax.f32 %v1239_v17, 0.0  ;;  %v1242_v15 = vadd.f32 %v1184_v18, %v2808_v52  ;;  %v1243_v49 = vadd.f32 %v1087_v63, %v2810_v46  ;;  %v1186_v7 = vpop.f32.mrb[74].mxu1  ;;  %v1089_v38 = vpop.f32.mrb[75].mxu0 }
 0x41d   :  { %v1289_v61 = vmax.f32 %v1241_v39, 0.0  ;;  %v1288_v19 = vmax.f32 %v1240_v53, 0.0  ;;  %v1245_v33 = vadd.f32 %v1186_v7, %v2812_v5  ;;  %v1244_v42 = vadd.f32 %v1089_v38, %v2814_v14  ;;  %v1188_v47 = vpop.f32.mrb[75].mxu1  ;;  %v2831_v39 = vld [vmem:[#allocation3_spill] sm:$0xff] }
 0x41e   :  { %1335 = vst [vmem:[%s2599_s5 + $0x100] sm:$0xff] %v1287_v41  ;;  %v1290_v23 = vmax.f32 %v1242_v15, 0.0  ;;  %v1291_v24 = vmax.f32 %v1243_v49, 0.0  ;;  %v1246_v57 = vadd.f32 %v1188_v47, %v2816_v32  ;;  %v2832_v22 = vmax.f32 %v2831_v39, 0.0 }
 0x41f   :  { %1337 = vst [vmem:[%s2599_s5 + $0x110] sm:$0xff] %v1289_v61  ;;  %1336 = vst [vmem:[%s2599_s5 + $0x108] sm:$0xff] %v1288_v19  ;;  %v1293_v1 = vmax.f32 %v1245_v33, 0.0  ;;  %v1292_v0 = vmax.f32 %v1244_v42, 0.0 }
 0x420   :  { %1338 = vst [vmem:[%s2599_s5 + $0x118] sm:$0xff] %v1290_v23  ;;  %1339 = vst [vmem:[%s2599_s5 + $0x120] sm:$0xff] %v1291_v24  ;;  %v1294_v45 = vmax.f32 %v1246_v57, 0.0 }
 0x421   :  { %1341 = vst [vmem:[%s2599_s5 + $0x130] sm:$0xff] %v1293_v1  ;;  %1340 = vst [vmem:[%s2599_s5 + $0x128] sm:$0xff] %v1292_v0  ;;  %v1093_v34 = vpop.f32.mrb[76].mxu0 }
 0x422   :  { %1342 = vst [vmem:[%s2599_s5 + $0x138] sm:$0xff] %v1294_v45  ;;  %v1247_v2 = vadd.f32 %v1093_v34, %v2818_v11  ;;  %v1192_v40 = vpop.f32.mrb[76].mxu1  ;;  %v1095_v51 = vpop.f32.mrb[77].mxu0 }
 0x423   :  { %v1249_v55 = vadd.f32 %v1192_v40, %v2820_v54  ;;  %v1248_v44 = vadd.f32 %v1095_v51, %v2822_v60  ;;  %v1194_v35 = vpop.f32.mrb[77].mxu1  ;;  %v1097_v28 = vpop.f32.mrb[78].mxu0 }
 0x424   :  { %v1295_v12 = vmax.f32 %v1247_v2, 0.0  ;;  %v1250_v21 = vadd.f32 %v1194_v35, %v2824_v20  ;;  %v1251_v59 = vadd.f32 %v1097_v28, %v2826_v30  ;;  %v1196_v58 = vpop.f32.mrb[78].mxu1  ;;  %v1099_v50 = vpop.f32.mrb[79].mxu0 }
 0x425   :  { %v1297_v25 = vmax.f32 %v1249_v55, 0.0  ;;  %v1296_v56 = vmax.f32 %v1248_v44, 0.0  ;;  %v1253_v43 = vadd.f32 %v1196_v58, %v2828_v29  ;;  %v1252_v17 = vadd.f32 %v1099_v50, %v2830_v31  ;;  %v1198_v9 = vpop.f32.mrb[79].mxu1 }
 0x426   :  { %1343 = vst [vmem:[%s2599_s5 + $0x140] sm:$0xff] %v1295_v12  ;;  %v1298_v3 = vmax.f32 %v1250_v21, 0.0  ;;  %v1299_v62 = vmax.f32 %v1251_v59, 0.0  ;;  %v1254_v53 = vadd.f32 %v1198_v9, %v2832_v22 }
 0x427   :  { %1345 = vst [vmem:[%s2599_s5 + $0x150] sm:$0xff] %v1297_v25  ;;  %1344 = vst [vmem:[%s2599_s5 + $0x148] sm:$0xff] %v1296_v56  ;;  %v1301_v18 = vmax.f32 %v1253_v43, 0.0  ;;  %v1300_v63 = vmax.f32 %v1252_v17, 0.0 }
 0x428   :  { %1346 = vst [vmem:[%s2599_s5 + $0x158] sm:$0xff] %v1298_v3  ;;  %1347 = vst [vmem:[%s2599_s5 + $0x160] sm:$0xff] %v1299_v62  ;;  %v1302_v41 = vmax.f32 %v1254_v53, 0.0 }
 0x429   :  { %1349 = vst [vmem:[%s2599_s5 + $0x170] sm:$0xff] %v1301_v18  ;;  %1348 = vst [vmem:[%s2599_s5 + $0x168] sm:$0xff] %v1300_v63  ;;  %v1103_v52 = vpop.f32.mrb[80].mxu0 }
 0x42a   :  { %1350 = vst [vmem:[%s2599_s5 + $0x178] sm:$0xff] %v1302_v41  ;;  %v1202_v15 = vpop.f32.mrb[80].mxu1  ;;  %v1104_v48 = vpop.f32.mrb[81].mxu0 }
 0x42b   :  { %v1203_v46 = vpop.f32.mrb[81].mxu1  ;;  %v1105_v49 = vpop.f32.mrb[82].mxu0 }
 0x42c   :  { %v1204_v7 = vpop.f32.mrb[82].mxu1  ;;  %v1106_v38 = vpop.f32.mrb[83].mxu0 }
 0x42d   :  { %v1205_v61 = vpop.f32.mrb[83].mxu1 }

</bundles_post_ra>
